<compile_context>
chip_gen: v5e
topology: v5e:2x2
jax: 0.10.0
libtpu: 0.0.40
codegen_flags: <defaults>
</compile_context>

<pallas_src>
import jax
import jax.numpy as jnp
from jax import lax
from jax.experimental import pallas as pl
from jax.experimental.pallas import tpu as pltpu


def _upsample_kernel(a_ref, x_ref, w_ref, b_ref, o_ref, lhs_ref):
    """One output row band.

    a_ref:   SMEM (1,) f32                 PReLU slope
    x_ref:   VMEM (1, Hp+2, W+2, Cin)      whole zero-padded image (NHWC)
    w_ref:   VMEM (9*Cin, Cout)            conv weights, Cout permuted to (i, j, co)
    b_ref:   VMEM (1, Cout) f32            bias, same output-channel permutation
    o_ref:   VMEM (1, TH, r, W, r*Co)      pixel-shuffled output row band
    lhs_ref: VMEM (TH, W, 9*Cin) scratch   in-kernel im2col patches
    """
    TH = o_ref.shape[1]
    r = o_ref.shape[2]
    W = o_ref.shape[3]
    rco = o_ref.shape[4]
    cin = x_ref.shape[3]
    k9 = lhs_ref.shape[2]

    t = pl.program_id(1)
    row0 = pl.multiple_of(t * TH, TH)

    # ---- in-kernel im2col (replaces v2's HBM patches intermediate) ---------
    # For each horizontal tap kw load one (TH+2, W, Cin) slab; the three
    # vertical taps kh are leading-dim slices of it (vreg select, ~free).
    for kw in range(3):
        slab = x_ref[0, pl.ds(row0, TH + 2), kw:kw + W, :]
        for kh in range(3):
            c0 = (kh * 3 + kw) * cin
            lhs_ref[:, :, c0:c0 + cin] = slab[kh:kh + TH]

    # ---- single K = 9*Cin MXU contraction + fused bias / scalar PReLU ------
    lhs = lhs_ref[...].reshape(TH * W, k9)          # layout-free when W % 8 == 0
    acc = jnp.dot(lhs, w_ref[...], preferred_element_type=jnp.float32)
    acc = acc + b_ref[...]
    a = a_ref[0]
    acc = jnp.where(acc >= 0, acc, a * acc)

    # ---- store in pixel-shuffled layout (lane-dense: r*Co = 128 for r=2) ---
    y = acc.reshape(TH, W, r * rco)
    for i in range(r):
        o_ref[0, :, i, :, :] = y[:, :, i * rco:(i + 1) * rco].astype(o_ref.dtype)


def _plan_tiles(N, H, W, Cin, r, Cout, in_itemsize, out_itemsize,
                budget_bytes=36 * 1024 * 1024):
    """Pick the row-band height TH and a vmem limit from actual block bytes."""
    Co = Cout // (r * r)
    rco = r * Co
    K9 = 9 * Cin
    pad8 = lambda v: ((v + 7) // 8) * 8
    pad128 = lambda v: ((v + 127) // 128) * 128
    cdiv = lambda a, b: -(-a // b)

    # TH-independent VMEM (double-buffered whole padded input, weights, bias).
    in_img = (H + 2) * pad8(W + 2) * pad128(Cin) * in_itemsize
    fixed = 2 * in_img + pad8(K9) * pad128(Cout) * in_itemsize + 8 * pad128(Cout) * 4
    # Per-output-row VMEM: double-buffered output band + im2col scratch row.
    out_row = r * pad8(W) * pad128(rco) * out_itemsize
    lhs_row = pad8(W) * pad128(K9) * in_itemsize
    per_row = 2 * out_row + lhs_row

    avail = max(per_row, budget_bytes - fixed)
    th_cap = int(max(1, min(H, avail // per_row, max(8, 4096 // max(W, 1)))))
    # Prefer an exact divisor of H near the cap (no masked tail band); otherwise
    # keep the cap and use a cdiv grid with a masked last band (avoids the old
    # TH=1 collapse for prime/odd H).
    div = max((d for d in range(1, th_cap + 1) if H % d == 0), default=1)
    th = div if 2 * div > th_cap else th_cap
    n_bands = int(cdiv(H, th))
    # v7x has 2 TensorCores per chip: guarantee >= 2 steps on a parallel axis.
    if N * n_bands < 2 and H > 1:
        th = int(cdiv(H, 2))
        n_bands = int(cdiv(H, th))

    hp = th * n_bands
    need = (2 * (hp + 2) * pad8(W + 2) * pad128(Cin) * in_itemsize
            + 2 * th * r * pad8(W) * pad128(rco) * out_itemsize
            + th * pad8(W) * pad128(K9) * in_itemsize
            + pad8(K9) * pad128(Cout) * in_itemsize + 8 * pad128(Cout) * 4)
    vmem_limit = int(min(max(32 << 20, need + (8 << 20)), 56 << 20))
    return th, n_bands, vmem_limit


def upsample_block(x_nchw, params, up_scale, *, out_format="NCHW",
                   compute_dtype=jnp.float32, out_dtype=None):
    """Forward of UpsampleBLock.  x_nchw: (N, Cin, H, W).

    out_format="NCHW" (default) matches the PyTorch module exactly.
    out_format="NHWC" skips the final layout transpose (recommended when the
    consumer accepts channels-last; it removes a full HBM pass of the 4x output).
    """
    w_hwio, bias, prelu_a = params
    r = int(up_scale)
    N, Cin, H, W = x_nchw.shape
    Cout = w_hwio.shape[-1]
    assert Cout % (r * r) == 0
    Co = Cout // (r * r)
    rco = r * Co
    K9 = 9 * Cin
    if W % 8 != 0:
        # TODO(synk): pad W to a multiple of 8 in the wrapper to support odd widths.
        raise NotImplementedError("upsample_block kernel requires W % 8 == 0")
    out_dtype = x_nchw.dtype if out_dtype is None else out_dtype

    th, n_bands, vmem_limit = _plan_tiles(
        N, H, W, Cin, r, Cout,
        jnp.dtype(compute_dtype).itemsize, jnp.dtype(out_dtype).itemsize)
    hp = th * n_bands

    # ---- wrapper-side packing (tiny input only; no im2col intermediate) ----
    x_nhwc = jnp.transpose(x_nchw, (0, 2, 3, 1)).astype(compute_dtype)
    # 1-px conv halo + zero rows at the bottom so the last (masked) band never
    # reads out of bounds.
    x_pad = jnp.pad(x_nhwc, ((0, 0), (1, 1 + hp - H), (1, 1), (0, 0)))
    # TODO(synk): for large H*W*Cin switch the input to halo row-band BlockSpecs
    # (pl.Element offsets) instead of whole-image blocks.

    # Permute output channels so old c = co*r*r + i*r + j lands at i*(r*Co)+j*Co+co;
    # the kernel's (N, H, r, W, r*Co) output then reshapes contiguously (zero cost)
    # into the pixel-shuffled NHWC result.
    w2 = (w_hwio.reshape(K9, Co, r, r).transpose(0, 2, 3, 1)
          .reshape(K9, Cout).astype(compute_dtype))
    b2 = bias.reshape(Co, r, r).transpose(1, 2, 0).reshape(1, Cout).astype(jnp.float32)
    a_arr = jnp.asarray(prelu_a, dtype=jnp.float32).reshape(1)

    grid = (N, n_bands)
    cost = pl.CostEstimate(
        flops=2 * N * H * W * K9 * Cout,
        transcendentals=0,
        bytes_accessed=int(x_pad.size * x_pad.dtype.itemsize
                           + w2.size * w2.dtype.itemsize + b2.size * 4
                           + N * H * r * W * rco * jnp.dtype(out_dtype).itemsize))

    out5 = pl.pallas_call(
        _upsample_kernel,
        out_shape=jax.ShapeDtypeStruct((N, H, r, W, rco), out_dtype),
        grid=grid,
        in_specs=[
            pl.BlockSpec(memory_space=pltpu.SMEM),                            # PReLU slope
            pl.BlockSpec((1, hp + 2, W + 2, Cin), lambda n, t: (n, 0, 0, 0)),  # padded image
            pl.BlockSpec((K9, Cout), lambda n, t: (0, 0)),                     # weights
            pl.BlockSpec((1, Cout), lambda n, t: (0, 0)),                      # bias
        ],
        out_specs=pl.BlockSpec((1, th, r, W, rco), lambda n, t: (n, t, 0, 0, 0)),
        scratch_shapes=[pltpu.VMEM((th, W, K9), compute_dtype)],
        compiler_params=pltpu.CompilerParams(
            dimension_semantics=("parallel", "parallel"),
            vmem_limit_bytes=vmem_limit),
        cost_estimate=cost,
    )(a_arr, x_pad, w2, b2)

    # Zero-cost contiguous reshape == PixelShuffle (NHWC).
    out_nhwc = out5.reshape(N, H * r, W * r, Co)
    if out_format == "NHWC":
        return out_nhwc
    # Layout-parity path with the PyTorch module (costs one extra HBM pass).
    return jnp.transpose(out_nhwc, (0, 3, 1, 2))


def init_params(key, in_channels, out_channels=256, k=3):
    """Deterministic synthetic parameter init (conv weight HWIO, bias, PReLU a)."""
    kw, kb = jax.random.split(key)
    fan_in = in_channels * k * k
    bound = 1.0 / (fan_in ** 0.5)
    w_hwio = jax.random.uniform(kw, (k, k, in_channels, out_channels),
                                jnp.float32, -bound, bound)
    bias = jax.random.uniform(kb, (out_channels,), jnp.float32, -bound, bound)
    prelu_a = jnp.float32(0.25)    # PyTorch PReLU default init
    return w_hwio, bias, prelu_a


def _pixel_shuffle_nchw(x, r):
    N, C, H, W = x.shape
    Co = C // (r * r)
    x = x.reshape(N, Co, r, r, H, W)
    x = jnp.transpose(x, (0, 1, 4, 2, 5, 3))   # (N, Co, H, r, W, r)
    return x.reshape(N, Co, H * r, W * r)


def _reference(x_nchw, params, up_scale):
    """Pure-JAX reference for verification."""
    w_hwio, bias, prelu_a = params
    y = lax.conv_general_dilated(
        x_nchw, w_hwio, window_strides=(1, 1), padding=((1, 1), (1, 1)),
        dimension_numbers=("NCHW", "HWIO", "NCHW"))
    y = y + bias.reshape(1, -1, 1, 1)
    y = _pixel_shuffle_nchw(y, up_scale)
    return jnp.where(y >= 0, y, prelu_a * y)


if __name__ == "__main__":
    in_channels, up_scale = 4, 2
    N, H, W = 2, 16, 16

    key = jax.random.PRNGKey(0)
    kx, kp = jax.random.split(key)
    x = jax.random.normal(kx, (N, in_channels, H, W), jnp.float32)
    params = init_params(kp, in_channels)

    # 1) Module-parity path (f32, NCHW output) -- tight check vs reference.
    out = jax.block_until_ready(upsample_block(x, params, up_scale))
    ref = jax.block_until_ready(_reference(x, params, up_scale))
    assert out.shape == (N, 256 // (up_scale * up_scale), H * up_scale, W * up_scale)
    assert jnp.allclose(out, ref, atol=1e-4, rtol=1e-4)

    # 2) Bandwidth-optimized path (bf16 operands + bf16 NHWC output, no final
    #    transpose) -- looser tolerance per the bf16 trade-off.
    out_fast = jax.block_until_ready(
        upsample_block(x, params, up_scale, out_format="NHWC",
                       compute_dtype=jnp.bfloat16, out_dtype=jnp.bfloat16))
    ref_nhwc = jnp.transpose(ref, (0, 2, 3, 1))
    assert out_fast.shape == ref_nhwc.shape
    assert jnp.allclose(out_fast.astype(jnp.float32), ref_nhwc, atol=5e-2, rtol=5e-2)

    print("KERNEL_OK")
</pallas_src>

<mosaic_0001>
module attributes {stable_mosaic.version = 11 : i64} {
  func.func @_upsample_kernel(%arg0: i32, %arg1: i32, %arg2: memref<1xf32, #tpu.memory_space<smem>>, %arg3: memref<1x18x18x4xf32, #tpu.memory_space<vmem>>, %arg4: memref<36x256xf32, #tpu.memory_space<vmem>>, %arg5: memref<1x256xf32, #tpu.memory_space<vmem>>, %arg6: memref<1x16x2x16x128xf32, #tpu.memory_space<vmem>>, %arg7: memref<16x16x36xf32, #tpu.memory_space<vmem>>) attributes {dimension_semantics = [#tpu.dimension_semantics<parallel>, #tpu.dimension_semantics<parallel>], iteration_bounds = array<i64: 2, 1>, scalar_prefetch = 0 : i64, scratch_operands = 1 : i64, tpu.core_type = #tpu.core_type<tc>, window_params = [{transform_indices = @transform_0, window_bounds = array<i64: 1>}, {transform_indices = @transform_1, window_bounds = array<i64: 1, 18, 18, 4>}, {pipeline_mode = #tpu.pipeline_mode<synchronous>, transform_indices = @transform_2, window_bounds = array<i64: 36, 256>}, {pipeline_mode = #tpu.pipeline_mode<synchronous>, transform_indices = @transform_3, window_bounds = array<i64: 1, 256>}, {transform_indices = @transform_4, window_bounds = array<i64: 1, 16, 2, 16, 128>}]} {
    %c16_i32 = arith.constant 16 : i32
    %0 = arith.muli %arg1, %c16_i32 : i32
    %1 = tpu.assume_multiple %0, 16 : i32
    %c0 = arith.constant 0 : index
    %2 = arith.index_cast %1 : i32 to index
    %c0_0 = arith.constant 0 : index
    %c0_1 = arith.constant 0 : index
    %3 = vector.load %arg3[%c0, %2, %c0_0, %c0_1] : memref<1x18x18x4xf32, #tpu.memory_space<vmem>>, vector<1x18x16x4xf32>
    %4 = vector.shape_cast %3 : vector<1x18x16x4xf32> to vector<18x16x4xf32>
    %5 = vector.extract_strided_slice %4 {offsets = [0, 0, 0], sizes = [16, 16, 4], strides = [1, 1, 1]} : vector<18x16x4xf32> to vector<16x16x4xf32>
    %c0_2 = arith.constant 0 : index
    %c0_3 = arith.constant 0 : index
    %c0_4 = arith.constant 0 : index
    %6 = vector.load %arg7[%c0_2, %c0_3, %c0_4] : memref<16x16x36xf32, #tpu.memory_space<vmem>>, vector<16x16x4xf32>
    tpu.vector_store %arg7[%c0_2, %c0_3, %c0_4], %5 {strides = array<i32>} : memref<16x16x36xf32, #tpu.memory_space<vmem>>, vector<16x16x4xf32>,
    %7 = vector.extract_strided_slice %4 {offsets = [1, 0, 0], sizes = [16, 16, 4], strides = [1, 1, 1]} : vector<18x16x4xf32> to vector<16x16x4xf32>
    %c0_5 = arith.constant 0 : index
    %c0_6 = arith.constant 0 : index
    %c12 = arith.constant 12 : index
    %8 = vector.load %arg7[%c0_5, %c0_6, %c12] : memref<16x16x36xf32, #tpu.memory_space<vmem>>, vector<16x16x4xf32>
    tpu.vector_store %arg7[%c0_5, %c0_6, %c12], %7 {strides = array<i32>} : memref<16x16x36xf32, #tpu.memory_space<vmem>>, vector<16x16x4xf32>,
    %9 = vector.extract_strided_slice %4 {offsets = [2, 0, 0], sizes = [16, 16, 4], strides = [1, 1, 1]} : vector<18x16x4xf32> to vector<16x16x4xf32>
    %c0_7 = arith.constant 0 : index
    %c0_8 = arith.constant 0 : index
    %c24 = arith.constant 24 : index
    %10 = vector.load %arg7[%c0_7, %c0_8, %c24] : memref<16x16x36xf32, #tpu.memory_space<vmem>>, vector<16x16x4xf32>
    tpu.vector_store %arg7[%c0_7, %c0_8, %c24], %9 {strides = array<i32>} : memref<16x16x36xf32, #tpu.memory_space<vmem>>, vector<16x16x4xf32>,
    %c0_9 = arith.constant 0 : index
    %11 = arith.index_cast %1 : i32 to index
    %c1 = arith.constant 1 : index
    %c0_10 = arith.constant 0 : index
    %12 = vector.load %arg3[%c0_9, %11, %c1, %c0_10] : memref<1x18x18x4xf32, #tpu.memory_space<vmem>>, vector<1x18x16x4xf32>
    %13 = vector.shape_cast %12 : vector<1x18x16x4xf32> to vector<18x16x4xf32>
    %14 = vector.extract_strided_slice %13 {offsets = [0, 0, 0], sizes = [16, 16, 4], strides = [1, 1, 1]} : vector<18x16x4xf32> to vector<16x16x4xf32>
    %c0_11 = arith.constant 0 : index
    %c0_12 = arith.constant 0 : index
    %c4 = arith.constant 4 : index
    %15 = vector.load %arg7[%c0_11, %c0_12, %c4] : memref<16x16x36xf32, #tpu.memory_space<vmem>>, vector<16x16x4xf32>
    tpu.vector_store %arg7[%c0_11, %c0_12, %c4], %14 {strides = array<i32>} : memref<16x16x36xf32, #tpu.memory_space<vmem>>, vector<16x16x4xf32>,
    %16 = vector.extract_strided_slice %13 {offsets = [1, 0, 0], sizes = [16, 16, 4], strides = [1, 1, 1]} : vector<18x16x4xf32> to vector<16x16x4xf32>
    %c0_13 = arith.constant 0 : index
    %c0_14 = arith.constant 0 : index
    %c16 = arith.constant 16 : index
    %17 = vector.load %arg7[%c0_13, %c0_14, %c16] : memref<16x16x36xf32, #tpu.memory_space<vmem>>, vector<16x16x4xf32>
    tpu.vector_store %arg7[%c0_13, %c0_14, %c16], %16 {strides = array<i32>} : memref<16x16x36xf32, #tpu.memory_space<vmem>>, vector<16x16x4xf32>,
    %18 = vector.extract_strided_slice %13 {offsets = [2, 0, 0], sizes = [16, 16, 4], strides = [1, 1, 1]} : vector<18x16x4xf32> to vector<16x16x4xf32>
    %c0_15 = arith.constant 0 : index
    %c0_16 = arith.constant 0 : index
    %c28 = arith.constant 28 : index
    %19 = vector.load %arg7[%c0_15, %c0_16, %c28] : memref<16x16x36xf32, #tpu.memory_space<vmem>>, vector<16x16x4xf32>
    tpu.vector_store %arg7[%c0_15, %c0_16, %c28], %18 {strides = array<i32>} : memref<16x16x36xf32, #tpu.memory_space<vmem>>, vector<16x16x4xf32>,
    %c0_17 = arith.constant 0 : index
    %20 = arith.index_cast %1 : i32 to index
    %c2 = arith.constant 2 : index
    %c0_18 = arith.constant 0 : index
    %21 = vector.load %arg3[%c0_17, %20, %c2, %c0_18] : memref<1x18x18x4xf32, #tpu.memory_space<vmem>>, vector<1x18x16x4xf32>
    %22 = vector.shape_cast %21 : vector<1x18x16x4xf32> to vector<18x16x4xf32>
    %23 = vector.extract_strided_slice %22 {offsets = [0, 0, 0], sizes = [16, 16, 4], strides = [1, 1, 1]} : vector<18x16x4xf32> to vector<16x16x4xf32>
    %c0_19 = arith.constant 0 : index
    %c0_20 = arith.constant 0 : index
    %c8 = arith.constant 8 : index
    %24 = vector.load %arg7[%c0_19, %c0_20, %c8] : memref<16x16x36xf32, #tpu.memory_space<vmem>>, vector<16x16x4xf32>
    tpu.vector_store %arg7[%c0_19, %c0_20, %c8], %23 {strides = array<i32>} : memref<16x16x36xf32, #tpu.memory_space<vmem>>, vector<16x16x4xf32>,
    %25 = vector.extract_strided_slice %22 {offsets = [1, 0, 0], sizes = [16, 16, 4], strides = [1, 1, 1]} : vector<18x16x4xf32> to vector<16x16x4xf32>
    %c0_21 = arith.constant 0 : index
    %c0_22 = arith.constant 0 : index
    %c20 = arith.constant 20 : index
    %26 = vector.load %arg7[%c0_21, %c0_22, %c20] : memref<16x16x36xf32, #tpu.memory_space<vmem>>, vector<16x16x4xf32>
    tpu.vector_store %arg7[%c0_21, %c0_22, %c20], %25 {strides = array<i32>} : memref<16x16x36xf32, #tpu.memory_space<vmem>>, vector<16x16x4xf32>,
    %27 = vector.extract_strided_slice %22 {offsets = [2, 0, 0], sizes = [16, 16, 4], strides = [1, 1, 1]} : vector<18x16x4xf32> to vector<16x16x4xf32>
    %c0_23 = arith.constant 0 : index
    %c0_24 = arith.constant 0 : index
    %c32 = arith.constant 32 : index
    %28 = vector.load %arg7[%c0_23, %c0_24, %c32] : memref<16x16x36xf32, #tpu.memory_space<vmem>>, vector<16x16x4xf32>
    tpu.vector_store %arg7[%c0_23, %c0_24, %c32], %27 {strides = array<i32>} : memref<16x16x36xf32, #tpu.memory_space<vmem>>, vector<16x16x4xf32>,
    %c0_25 = arith.constant 0 : index
    %c0_26 = arith.constant 0 : index
    %c0_27 = arith.constant 0 : index
    %29 = vector.load %arg7[%c0_25, %c0_26, %c0_27] : memref<16x16x36xf32, #tpu.memory_space<vmem>>, vector<16x16x36xf32>
    %30 = vector.shape_cast %29 : vector<16x16x36xf32> to vector<256x36xf32>
    %c0_28 = arith.constant 0 : index
    %c0_29 = arith.constant 0 : index
    %31 = vector.load %arg4[%c0_28, %c0_29] : memref<36x256xf32, #tpu.memory_space<vmem>>, vector<36x256xf32>
    %cst = arith.constant dense<0.000000e+00> : vector<256x256xf32>
    %32 = tpu.matmul %30, %31, %cst {dimension_numbers = #tpu.dot_dimension_numbers<[1], [0], [0], [1], [0, 0, 1, 1], [], []>} : vector<256x36xf32>, vector<36x256xf32>, vector<256x256xf32> -> vector<256x256xf32>
    %c0_30 = arith.constant 0 : index
    %c0_31 = arith.constant 0 : index
    %33 = vector.load %arg5[%c0_30, %c0_31] : memref<1x256xf32, #tpu.memory_space<vmem>>, vector<1x256xf32>
    %34 = vector.broadcast %33 : vector<1x256xf32> to vector<256x256xf32>
    %35 = arith.addf %32, %34 : vector<256x256xf32>
    %c0_32 = arith.constant 0 : index
    %36 = memref.load %arg2[%c0_32] : memref<1xf32, #tpu.memory_space<smem>>
    %cst_33 = arith.constant 0.000000e+00 : f32
    %37 = vector.broadcast %cst_33 : f32 to vector<256x256xf32>
    %38 = arith.cmpf oge, %35, %37 : vector<256x256xf32>
    %39 = vector.broadcast %36 : f32 to vector<256x256xf32>
    %40 = arith.mulf %39, %35 : vector<256x256xf32>
    %41 = arith.select %38, %35, %40 : vector<256x256xi1>, vector<256x256xf32>
    %42 = vector.shape_cast %41 : vector<256x256xf32> to vector<16x16x256xf32>
    %43 = vector.extract_strided_slice %42 {offsets = [0, 0, 0], sizes = [16, 16, 128], strides = [1, 1, 1]} : vector<16x16x256xf32> to vector<16x16x128xf32>
    %c0_34 = arith.constant 0 : index
    %c0_35 = arith.constant 0 : index
    %c0_36 = arith.constant 0 : index
    %c0_37 = arith.constant 0 : index
    %c0_38 = arith.constant 0 : index
    %44 = vector.load %arg6[%c0_34, %c0_35, %c0_36, %c0_37, %c0_38] : memref<1x16x2x16x128xf32, #tpu.memory_space<vmem>>, vector<1x16x1x16x128xf32>
    %45 = vector.shape_cast %44 : vector<1x16x1x16x128xf32> to vector<16x16x128xf32>
    %46 = vector.shape_cast %43 : vector<16x16x128xf32> to vector<1x16x1x16x128xf32>
    tpu.vector_store %arg6[%c0_34, %c0_35, %c0_36, %c0_37, %c0_38], %46 {strides = array<i32>} : memref<1x16x2x16x128xf32, #tpu.memory_space<vmem>>, vector<1x16x1x16x128xf32>,
    %47 = vector.extract_strided_slice %42 {offsets = [0, 0, 128], sizes = [16, 16, 128], strides = [1, 1, 1]} : vector<16x16x256xf32> to vector<16x16x128xf32>
    %c0_39 = arith.constant 0 : index
    %c0_40 = arith.constant 0 : index
    %c1_41 = arith.constant 1 : index
    %c0_42 = arith.constant 0 : index
    %c0_43 = arith.constant 0 : index
    %48 = vector.load %arg6[%c0_39, %c0_40, %c1_41, %c0_42, %c0_43] : memref<1x16x2x16x128xf32, #tpu.memory_space<vmem>>, vector<1x16x1x16x128xf32>
    %49 = vector.shape_cast %48 : vector<1x16x1x16x128xf32> to vector<16x16x128xf32>
    %50 = vector.shape_cast %47 : vector<16x16x128xf32> to vector<1x16x1x16x128xf32>
    tpu.vector_store %arg6[%c0_39, %c0_40, %c1_41, %c0_42, %c0_43], %50 {strides = array<i32>} : memref<1x16x2x16x128xf32, #tpu.memory_space<vmem>>, vector<1x16x1x16x128xf32>,
    return
  }
  func.func @transform_0(%arg0: i32, %arg1: i32) -> i32 {
    %c0_i32 = arith.constant 0 : i32
    %c0_i32_0 = arith.constant 0 : i32
    return %c0_i32 : i32
  }
  func.func @transform_1(%arg0: i32, %arg1: i32) -> (i32, i32, i32, i32) {
    %c0_i32 = arith.constant 0 : i32
    %c0_i32_0 = arith.constant 0 : i32
    %c0_i32_1 = arith.constant 0 : i32
    %c0_i32_2 = arith.constant 0 : i32
    return %arg0, %c0_i32, %c0_i32_0, %c0_i32_1 : i32, i32, i32, i32
  }
  func.func @transform_2(%arg0: i32, %arg1: i32) -> (i32, i32) {
    %c0_i32 = arith.constant 0 : i32
    %c0_i32_0 = arith.constant 0 : i32
    %c0_i32_1 = arith.constant 0 : i32
    return %c0_i32, %c0_i32_0 : i32, i32
  }
  func.func @transform_3(%arg0: i32, %arg1: i32) -> (i32, i32) {
    %c0_i32 = arith.constant 0 : i32
    %c0_i32_0 = arith.constant 0 : i32
    %c0_i32_1 = arith.constant 0 : i32
    return %c0_i32, %c0_i32_0 : i32, i32
  }
  func.func @transform_4(%arg0: i32, %arg1: i32) -> (i32, i32, i32, i32, i32) {
    %c0_i32 = arith.constant 0 : i32
    %c0_i32_0 = arith.constant 0 : i32
    %c0_i32_1 = arith.constant 0 : i32
    %c0_i32_2 = arith.constant 0 : i32
    return %arg0, %arg1, %c0_i32, %c0_i32_0, %c0_i32_1 : i32, i32, i32, i32, i32
  }
}

</mosaic_0001>

<bundles_post_ra>
// kernel: tpu_custom_call.1
= control target key start
LH: loop header
LB: loop body
LE: loop exit
PB: predicated region body
PF: predicated region fallthrough
CT: control target
= control target key end

     0   :  { %s4042_s0 = inlined_call_operand.<no memory space> [shape: f32[1], index: 0, kind: input, shape index: {}]   ;;  %s4043_s1 = inlined_call_operand.vmem [shape: f32[2,18,18,4], index: 1, kind: input, shape index: {}]   ;;  %s4044_s2 = inlined_call_operand.vmem [shape: f32[36,256], index: 2, kind: input, shape index: {}]   ;;  %s4045_s3 = inlined_call_operand.vmem [shape: f32[1,256], index: 3, kind: input, shape index: {}]   ;;  %s4046_s4 = inlined_call_operand.hbm [shape: f32[2,16,2,16,128], index: 4, kind: output, shape index: {}]  }
   0x1   :  { %9 = sst [smem:[#allocation3]] %s4042_s0 }
   0x2   :  { %10 = vsyncpa [#allocation5], 0 }
   0x3   :  { %12 = vsyncpa [#allocation5 + $0x1], 0  ;;  %s2528_s17 = smov 0   ;;  %s2530_s18 = smov 0  }
   0x4   :  { %s2532_s19 = smov 0   ;;  %s2534_s20 = smov 0  }
   0x5   :  { %s2536_s21 = smov 0   ;;  %s2538_s22 = smov 0  }
   0x6 LB: > { %s2225_s0 = sadd.s32 4294967295, %s2489_s22   ;;  %s2226_s23 = sadd.s32 4294967294, %s2489_s22   ;;  %s2489_s22 = sphi %s2538_s22, %s18_s22   ;;  %s2485_s21 = sphi %s2536_s21, %s4053_s21   ;;  %s2481_s20 = sphi %s2534_s20, %s4052_s20   ;;  %s2477_s19 = sphi %s2532_s19, %s4051_s19   ;;  %s2473_s18 = sphi %s2530_s18, %s4050_s18   ;;  %s2469_s17 = sphi %s2528_s17, %s4049_s17  }
   0x7   : > { %s30_s24 = sadd.s32 1, %s2485_s21  ;;  %s128_s25 = sadd.s32 1, %s2477_s19 }
   0x8   : > { %p32_p0 = scmp.ge.s32.totalorder %s30_s24, 2  ;;  %p138_p1 = scmp.ne.s32.totalorder %s2477_s19, %s2473_s18 }
   0x9   : > { %p139_p2 = scmp.eq.s32.totalorder %s2225_s0, 1  ;;  %p144_p3 = scmp.ne.s32.totalorder %s2473_s18, %s2469_s17 }
   0xa   : > { %s4055_s24 = smov (%p32_p0, %s30_s24), 0  ;;  %p145_p5 = scmp.eq.s32.totalorder %s2226_s23, 1 }
   0xb   : > { %p2568_p4 = por %p139_p2, %p138_p1  ;;  %s123_s27 = ssub.s32 %s2485_s21, %s4055_s24 }
   0xc   : > { %p2229_p6 = scmp.ge.s32.totalorder %s2489_s22, 1  ;;  %p126_p7 = scmp.eq.s32.totalorder %s123_s27, 0 }
   0xd   : > { %p2575_p8 = por %p145_p5, %p144_p3  ;;  %p180_p9 = scmp.lt.s32.totalorder %s2489_s22, 3 }
   0xe   : > { %s2581_s29 = scalar_select %p126_p7, %s2477_s19, %s128_s25  }
   0xf   : > { %p181_p10 = pnand %p2229_p6, %p180_p9 }
  0x10   : > { %p206_p11 = scmp.lt.s32.totalorder (!%p181_p10), %s2481_s20, 1  ;;  %s2491_s9 = smov (!%p181_p10), 12  }
  0x11   : > { %184 = sbr.rel (%p181_p10) target bundleno = 968 (0x3c8), region = 36  ;;  %s2492_s10 = smov (!%p181_p10), 24  }
  0x12   : > { %s2493_s11 = smov (!%p181_p10), 4   ;;  %s2494_s12 = smov (!%p181_p10), 16  }
  0x13   : > { %s2495_s13 = smov (!%p181_p10), 28   ;;  %s2496_s14 = smov (!%p181_p10), 8  }
  0x14   : > { %s2497_s15 = smov (!%p181_p10), 20   ;;  %s2498_s16 = smov (!%p181_p10), 32  }
  0x16   : > { %s207_s30 = scalar_select %p206_p11, %s2481_s20, 1  ;;  %vm251_vm0 = vcmask 31744   ;;  %vm412_vm1 = vcmask 130144   ;;  %vm543_vm2 = vcmask 228544   ;;  %vm740_vm3 = vcmask 64544  }
  0x17   : > { %vm871_vm4 = vcmask 162944   ;;  %vm1002_vm5 = vcmask 261344   ;;  %vm1639_vm6 = vcmask 1043456   ;;  %vm1199_vm7 = vcmask 97344  }
  0x18   : > { %s2346_s5 = smul.u32 432, %s207_s30  ;;  %vm1330_vm8 = vcmask 195744   ;;  %vm1461_vm9 = vcmask 294144   ;;  %vm1542_vm10 = vcmask 293888  }
  0x1a   : > { %s2588_s8 = scalar_lea.vmem %s4043_s1, %s2346_s5 }
  0x1b   : > { %v217_v0 = vld [vmem:[%s2588_s8 + $0x18] sm:$0xff]  ;;  %v2592_v1 = vld [vmem:[%s2588_s8 + $0x30] sm:$0xff]  ;;  %v218_v2 = vld [vmem:[%s2588_s8 + $0x20] sm:$0xff] }
  0x1c   : > { %316 = vrot.lane.b32.xlu0 %v217_v0, %s2491_s9  ;;  %254 = vst.msk [vmem:[#allocation2 + $0x10] sm:$0xff] %vm251_vm0, %v217_v0  ;;  %320 = vrot.lane.b32.xlu1 %v2592_v1, %s2491_s9  ;;  %v2603_v3 = vld [vmem:[%s2588_s8 + $0x38] sm:$0xff]  ;;  %v2606_v4 = vld [vmem:[%s2588_s8 + $0x48] sm:$0xff] }
  0x1d   : > { %256 = vst.msk [vmem:[#allocation2 + $0x20] sm:$0xff] %vm251_vm0, %v2592_v1  ;;  %v2611_v5 = vld [vmem:[%s2588_s8 + $0x60] sm:$0xff]  ;;  %324 = vrot.lane.b32.xlu2 %v2606_v4, %s2491_s9  ;;  %v2618_v6 = vld [vmem:[%s2588_s8 + $0x68] sm:$0xff]  ;;  %v2628_v8 = vld [vmem:[%s2588_s8 + $0x90] sm:$0xff] }
  0x1e   : > { %255 = vst.msk [vmem:[#allocation2 + $0x18] sm:$0xff] %vm251_vm0, %v218_v2  ;;  %v2623_v7 = vld [vmem:[%s2588_s8 + $0x80] sm:$0xff]  ;;  %v2638_v9 = vld [vmem:[%s2588_s8 + $0xa8] sm:$0xff]  ;;  %v2641_v10 = vld [vmem:[%s2588_s8 + $0x50] sm:$0xff] }
  0x1f   : > { %257 = vst.msk [vmem:[#allocation2 + $0x28] sm:$0xff] %vm251_vm0, %v2603_v3  ;;  %v2646_v11 = vld [vmem:[%s2588_s8 + $0xb0] sm:$0xff]  ;;  %v2655_v12 = vld [vmem:[%s2588_s8 + $0xc8] sm:$0xff]  ;;  %v2660_v13 = vld [vmem:[%s2588_s8 + $0xd8] sm:$0xff] }
  0x20   : > { %260 = vst.msk [vmem:[#allocation2 + $0x40] sm:$0xff] %vm251_vm0, %v2611_v5  ;;  %v2665_v14 = vld [vmem:[%s2588_s8 + $0x78] sm:$0xff]  ;;  %v2670_v15 = vld [vmem:[%s2588_s8 + $0xf0] sm:$0xff]  ;;  %v2700_v19 = vld [vmem:[%s2588_s8 + $0x120] sm:$0xff] }
  0x21   : > { %261 = vst.msk [vmem:[#allocation2 + $0x48] sm:$0xff] %vm251_vm0, %v2618_v6  ;;  %v2679_v16 = vld [vmem:[%s2588_s8 + $0xf8] sm:$0xff]  ;;  %v2689_v18 = vld [vmem:[%s2588_s8 + $0x110] sm:$0xff]  ;;  %v2705_v20 = vld [vmem:[%s2588_s8 + $0xc0] sm:$0xff] }
  0x22   : > { %263 = vst.msk [vmem:[#allocation2 + $0x58] sm:$0xff] %vm251_vm0, %v2623_v7  ;;  %v2684_v17 = vld [vmem:[%s2588_s8 + $0x98] sm:$0xff]  ;;  %v2721_v22 = vld [vmem:[%s2588_s8 + $0x140] sm:$0xff]  ;;  %v2742_v25 = vld [vmem:[%s2588_s8 + $0x168] sm:$0xff] }
  0x23   : > { %264 = vst.msk [vmem:[#allocation2 + $0x60] sm:$0xff] %vm251_vm0, %v2628_v8  ;;  %v2710_v21 = vld [vmem:[%s2588_s8 + $0x138] sm:$0xff]  ;;  %v2726_v23 = vld [vmem:[%s2588_s8 + $0xe0] sm:$0xff]  ;;  %v2747_v26 = vld [vmem:[%s2588_s8 + $0x108] sm:$0xff] }
  0x24   : > { %318 = vrot.lane.b32.xlu0 %v218_v2, %s2491_s9  ;;  %322 = vrot.lane.b32.xlu1 %v2603_v3, %s2491_s9  ;;  %258 = vst.msk [vmem:[#allocation2 + $0x30] sm:$0xff] %vm251_vm0, %v2606_v4  ;;  %v2731_v24 = vld [vmem:[%s2588_s8 + $0x158] sm:$0xff]  ;;  %v2758_v27 = vld [vmem:[%s2588_s8 + $0x128] sm:$0xff] }
  0x25   : > { %266 = vst.msk [vmem:[#allocation2 + $0x70] sm:$0xff] %vm251_vm0, %v2638_v9  ;;  %326 = vrot.lane.b32.xlu2 %v2641_v10, %s2491_s9  ;;  %v2769_v28 = vld [vmem:[%s2588_s8 + $0x150] sm:$0xff]  ;;  %v2793_v30 = vld [vmem:[%s2588_s8 + $0x180] sm:$0xff]  ;;  %v2796_v31 = vld [vmem:[%s2588_s8 + $0x188] sm:$0xff] }
  0x26   : > { %267 = vst.msk [vmem:[#allocation2 + $0x78] sm:$0xff] %vm251_vm0, %v2646_v11  ;;  %v2780_v29 = vld [vmem:[%s2588_s8 + $0x170] sm:$0xff]  ;;  %v215_v32 = vld [vmem:[%s2588_s8] sm:$0xff]  ;;  %v216_v33 = vld [vmem:[%s2588_s8 + $0x8] sm:$0xff] }
  0x27   : > { %259 = vst.msk [vmem:[#allocation2 + $0x38] sm:$0xff] %vm251_vm0, %v2641_v10  ;;  %v249_v55 = vld [vmem:[%s2588_s8 + $0x198] sm:$0xff]  ;;  %v250_v58 = vld [vmem:[%s2588_s8 + $0x1a0] sm:$0xff]  ;;  %v577_v61 = vld [vmem:[%s2588_s8 + $0x9] sm:$0xff] }
  0x28   : > { %269 = vst.msk [vmem:[#allocation2 + $0x88] sm:$0xff] %vm251_vm0, %v2655_v12  ;;  %v576_v59 = vld [vmem:[%s2588_s8 + $0x1] sm:$0xff]  ;;  %v2901_v0 = vld [vmem:[%s2588_s8 + $0x19] sm:$0xff] }
  0x29   : > { %270 = vst.msk [vmem:[#allocation2 + $0x90] sm:$0xff] %vm251_vm0, %v2660_v13 }
  0x2a   : > { %262 = vst.msk [vmem:[#allocation2 + $0x50] sm:$0xff] %vm251_vm0, %v2665_v14 }
  0x2b   : > { %272 = vst.msk [vmem:[#allocation2 + $0xa0] sm:$0xff] %vm251_vm0, %v2670_v15 }
  0x2c   : > { %328 = vrot.lane.b32.xlu0 %v2611_v5, %s2491_s9  ;;  %330 = vrot.lane.b32.xlu1 %v2618_v6, %s2491_s9  ;;  %273 = vst.msk [vmem:[#allocation2 + $0xa8] sm:$0xff] %vm251_vm0, %v2679_v16 }
  0x2d   : > { %265 = vst.msk [vmem:[#allocation2 + $0x68] sm:$0xff] %vm251_vm0, %v2684_v17  ;;  %332 = vrot.lane.b32.xlu2 %v2665_v14, %s2491_s9 }
  0x2e   : > { %275 = vst.msk [vmem:[#allocation2 + $0xb8] sm:$0xff] %vm251_vm0, %v2689_v18 }
  0x2f   : > { %276 = vst.msk [vmem:[#allocation2 + $0xc0] sm:$0xff] %vm251_vm0, %v2700_v19 }
  0x30   : > { %268 = vst.msk [vmem:[#allocation2 + $0x80] sm:$0xff] %vm251_vm0, %v2705_v20 }
  0x31   : > { %278 = vst.msk [vmem:[#allocation2 + $0xd0] sm:$0xff] %vm251_vm0, %v2710_v21 }
  0x32   : > { %279 = vst.msk [vmem:[#allocation2 + $0xd8] sm:$0xff] %vm251_vm0, %v2721_v22 }
  0x33   : > { %271 = vst.msk [vmem:[#allocation2 + $0x98] sm:$0xff] %vm251_vm0, %v2726_v23 }
  0x34   : > { %334 = vrot.lane.b32.xlu0 %v2623_v7, %s2491_s9  ;;  %336 = vrot.lane.b32.xlu1 %v2628_v8, %s2491_s9  ;;  %281 = vst.msk [vmem:[#allocation2 + $0xe8] sm:$0xff] %vm251_vm0, %v2731_v24 }
  0x35   : > { %338 = vrot.lane.b32.xlu2 %v2684_v17, %s2491_s9  ;;  %282 = vst.msk [vmem:[#allocation2 + $0xf0] sm:$0xff] %vm251_vm0, %v2742_v25 }
  0x36   : > { %274 = vst.msk [vmem:[#allocation2 + $0xb0] sm:$0xff] %vm251_vm0, %v2747_v26 }
  0x37   : > { %277 = vst.msk [vmem:[#allocation2 + $0xc8] sm:$0xff] %vm251_vm0, %v2758_v27 }
  0x38   : > { %280 = vst.msk [vmem:[#allocation2 + $0xe0] sm:$0xff] %vm251_vm0, %v2769_v28 }
  0x39   : > { %283 = vst.msk [vmem:[#allocation2 + $0xf8] sm:$0xff] %vm251_vm0, %v2780_v29 }
  0x3a   : > { %252 = vst.msk [vmem:[#allocation2] sm:$0xff] %vm251_vm0, %v215_v32 }
  0x3b   : > { %253 = vst.msk [vmem:[#allocation2 + $0x8] sm:$0xff] %vm251_vm0, %v216_v33  ;;  %v3002_v33 = vld [vmem:[%s2588_s8 + $0xe1] sm:$0xff] }
  0x3c   : > { %340 = vrot.lane.b32.xlu0 %v2638_v9, %s2491_s9  ;;  %342 = vrot.lane.b32.xlu1 %v2646_v11, %s2491_s9 }
  0x3d   : > { %344 = vrot.lane.b32.xlu2 %v2705_v20, %s2491_s9 }
  0x44   : > { %346 = vrot.lane.b32.xlu0 %v2655_v12, %s2491_s9  ;;  %348 = vrot.lane.b32.xlu1 %v2660_v13, %s2491_s9 }
  0x45   : > { %350 = vrot.lane.b32.xlu2 %v2726_v23, %s2491_s9 }
  0x4c   : > { %352 = vrot.lane.b32.xlu0 %v2670_v15, %s2491_s9  ;;  %354 = vrot.lane.b32.xlu1 %v2679_v16, %s2491_s9 }
  0x4d   : > { %356 = vrot.lane.b32.xlu2 %v2747_v26, %s2491_s9 }
  0x54   : > { %358 = vrot.lane.b32.xlu0 %v2689_v18, %s2491_s9  ;;  %360 = vrot.lane.b32.xlu1 %v2700_v19, %s2491_s9 }
  0x55   : > { %362 = vrot.lane.b32.xlu2 %v2758_v27, %s2491_s9 }
  0x5c   : > { %364 = vrot.lane.b32.xlu0 %v2710_v21, %s2491_s9  ;;  %366 = vrot.lane.b32.xlu1 %v2721_v22, %s2491_s9 }
  0x5d   : > { %368 = vrot.lane.b32.xlu2 %v2769_v28, %s2491_s9 }
  0x64   : > { %370 = vrot.lane.b32.xlu0 %v2731_v24, %s2491_s9  ;;  %372 = vrot.lane.b32.xlu1 %v2742_v25, %s2491_s9 }
  0x65   : > { %374 = vrot.lane.b32.xlu2 %v2780_v29, %s2491_s9 }
  0x6c   : > { %376 = vrot.lane.b32.xlu0 %v2793_v30, %s2491_s9  ;;  %378 = vrot.lane.b32.xlu1 %v2796_v31, %s2491_s9 }
  0x6d   : > { %447 = vrot.lane.b32.xlu2 %v2592_v1, %s2492_s10  ;;  %v2904_v1 = vld [vmem:[%s2588_s8 + $0x21] sm:$0xff] }
  0x74   : > { %449 = vrot.lane.b32.xlu0 %v2603_v3, %s2492_s10  ;;  %451 = vrot.lane.b32.xlu1 %v2606_v4, %s2492_s10  ;;  %v2912_v3 = vld [vmem:[%s2588_s8 + $0x31] sm:$0xff] }
  0x75   : > { %453 = vrot.lane.b32.xlu2 %v2641_v10, %s2492_s10 }
  0x77   : > { %v325_v34 = vpop.permute.xlu2 %324 }
  0x78   : > { %417 = vst.msk [vmem:[#allocation2 + $0x20] sm:$0xff] %vm412_vm1, %v325_v34 }
  0x7c   : > { %455 = vrot.lane.b32.xlu0 %v2611_v5, %s2492_s10  ;;  %457 = vrot.lane.b32.xlu1 %v2618_v6, %s2492_s10  ;;  %v2919_v6 = vld [vmem:[%s2588_s8 + $0x39] sm:$0xff] }
  0x7d   : > { %459 = vrot.lane.b32.xlu2 %v2665_v14, %s2492_s10 }
  0x7f   : > { %v327_v35 = vpop.permute.xlu2 %326 }
  0x80   : > { %418 = vst.msk [vmem:[#allocation2 + $0x28] sm:$0xff] %vm412_vm1, %v327_v35 }
  0x84   : > { %461 = vrot.lane.b32.xlu0 %v2623_v7, %s2492_s10  ;;  %463 = vrot.lane.b32.xlu1 %v2628_v8, %s2492_s10  ;;  %v2922_v7 = vld [vmem:[%s2588_s8 + $0x49] sm:$0xff] }
  0x85   : > { %465 = vrot.lane.b32.xlu2 %v2684_v17, %s2492_s10 }
  0x87   : > { %v333_v36 = vpop.permute.xlu2 %332 }
  0x88   : > { %421 = vst.msk [vmem:[#allocation2 + $0x40] sm:$0xff] %vm412_vm1, %v333_v36  ;;  %v3009_v36 = vld [vmem:[%s2588_s8 + $0xf1] sm:$0xff] }
  0x8c   : > { %467 = vrot.lane.b32.xlu0 %v2638_v9, %s2492_s10  ;;  %469 = vrot.lane.b32.xlu1 %v2646_v11, %s2492_s10  ;;  %v2930_v9 = vld [vmem:[%s2588_s8 + $0x51] sm:$0xff] }
  0x8d   : > { %471 = vrot.lane.b32.xlu2 %v2705_v20, %s2492_s10 }
  0x8e   : > { %v317_v37 = vpop.permute.xlu0 %316  ;;  %v321_v38 = vpop.permute.xlu1 %320 }
  0x8f   : > { %413 = vst.msk [vmem:[#allocation2] sm:$0xff] %vm412_vm1, %v317_v37  ;;  %v339_v39 = vpop.permute.xlu2 %338  ;;  %v3012_v37 = vld [vmem:[%s2588_s8 + $0xf9] sm:$0xff] }
  0x90   : > { %415 = vst.msk [vmem:[#allocation2 + $0x10] sm:$0xff] %vm412_vm1, %v321_v38 }
  0x91   : > { %424 = vst.msk [vmem:[#allocation2 + $0x58] sm:$0xff] %vm412_vm1, %v339_v39  ;;  %v3020_v39 = vld [vmem:[%s2588_s8 + $0x109] sm:$0xff] }
  0x94   : > { %473 = vrot.lane.b32.xlu0 %v2655_v12, %s2492_s10  ;;  %475 = vrot.lane.b32.xlu1 %v2660_v13, %s2492_s10  ;;  %v2937_v12 = vld [vmem:[%s2588_s8 + $0x61] sm:$0xff]  ;;  %v2940_v13 = vld [vmem:[%s2588_s8 + $0x69] sm:$0xff] }
  0x95   : > { %477 = vrot.lane.b32.xlu2 %v2726_v23, %s2492_s10 }
  0x96   : > { %v319_v40 = vpop.permute.xlu0 %318  ;;  %v323_v41 = vpop.permute.xlu1 %322 }
  0x97   : > { %414 = vst.msk [vmem:[#allocation2 + $0x8] sm:$0xff] %vm412_vm1, %v319_v40  ;;  %v345_v42 = vpop.permute.xlu2 %344 }
  0x98   : > { %416 = vst.msk [vmem:[#allocation2 + $0x18] sm:$0xff] %vm412_vm1, %v323_v41 }
  0x99   : > { %427 = vst.msk [vmem:[#allocation2 + $0x70] sm:$0xff] %vm412_vm1, %v345_v42  ;;  %v3027_v42 = vld [vmem:[%s2588_s8 + $0x111] sm:$0xff] }
  0x9c   : > { %479 = vrot.lane.b32.xlu0 %v2670_v15, %s2492_s10  ;;  %481 = vrot.lane.b32.xlu1 %v2679_v16, %s2492_s10  ;;  %v2948_v15 = vld [vmem:[%s2588_s8 + $0x79] sm:$0xff] }
  0x9d   : > { %483 = vrot.lane.b32.xlu2 %v2747_v26, %s2492_s10 }
  0x9e   : > { %v329_v43 = vpop.permute.xlu0 %328  ;;  %v331_v44 = vpop.permute.xlu1 %330 }
  0x9f   : > { %419 = vst.msk [vmem:[#allocation2 + $0x30] sm:$0xff] %vm412_vm1, %v329_v43  ;;  %v351_v45 = vpop.permute.xlu2 %350  ;;  %v3030_v43 = vld [vmem:[%s2588_s8 + $0x121] sm:$0xff] }
  0xa0   : > { %420 = vst.msk [vmem:[#allocation2 + $0x38] sm:$0xff] %vm412_vm1, %v331_v44 }
  0xa1   : > { %430 = vst.msk [vmem:[#allocation2 + $0x88] sm:$0xff] %vm412_vm1, %v351_v45  ;;  %v3038_v45 = vld [vmem:[%s2588_s8 + $0x129] sm:$0xff] }
  0xa4   : > { %485 = vrot.lane.b32.xlu0 %v2689_v18, %s2492_s10  ;;  %487 = vrot.lane.b32.xlu1 %v2700_v19, %s2492_s10  ;;  %v2955_v18 = vld [vmem:[%s2588_s8 + $0x81] sm:$0xff]  ;;  %v2958_v19 = vld [vmem:[%s2588_s8 + $0x91] sm:$0xff] }
  0xa5   : > { %489 = vrot.lane.b32.xlu2 %v2758_v27, %s2492_s10  ;;  %v2984_v27 = vld [vmem:[%s2588_s8 + $0xc1] sm:$0xff] }
  0xa6   : > { %v335_v46 = vpop.permute.xlu0 %334  ;;  %v337_v47 = vpop.permute.xlu1 %336 }
  0xa7   : > { %422 = vst.msk [vmem:[#allocation2 + $0x48] sm:$0xff] %vm412_vm1, %v335_v46  ;;  %v357_v48 = vpop.permute.xlu2 %356 }
  0xa8   : > { %423 = vst.msk [vmem:[#allocation2 + $0x50] sm:$0xff] %vm412_vm1, %v337_v47 }
  0xa9   : > { %433 = vst.msk [vmem:[#allocation2 + $0xa0] sm:$0xff] %vm412_vm1, %v357_v48  ;;  %v3045_v48 = vld [vmem:[%s2588_s8 + $0x139] sm:$0xff] }
  0xac   : > { %491 = vrot.lane.b32.xlu0 %v2710_v21, %s2492_s10  ;;  %493 = vrot.lane.b32.xlu1 %v2721_v22, %s2492_s10  ;;  %v2966_v21 = vld [vmem:[%s2588_s8 + $0x99] sm:$0xff] }
  0xad   : > { %495 = vrot.lane.b32.xlu2 %v2769_v28, %s2492_s10 }
  0xae   : > { %v341_v49 = vpop.permute.xlu0 %340  ;;  %v343_v50 = vpop.permute.xlu1 %342 }
  0xaf   : > { %425 = vst.msk [vmem:[#allocation2 + $0x60] sm:$0xff] %vm412_vm1, %v341_v49  ;;  %v363_v51 = vpop.permute.xlu2 %362  ;;  %v3048_v49 = vld [vmem:[%s2588_s8 + $0x141] sm:$0xff] }
  0xb0   : > { %426 = vst.msk [vmem:[#allocation2 + $0x68] sm:$0xff] %vm412_vm1, %v343_v50 }
  0xb1   : > { %436 = vst.msk [vmem:[#allocation2 + $0xb8] sm:$0xff] %vm412_vm1, %v363_v51  ;;  %v3056_v51 = vld [vmem:[%s2588_s8 + $0x151] sm:$0xff] }
  0xb4   : > { %497 = vrot.lane.b32.xlu0 %v2731_v24, %s2492_s10  ;;  %499 = vrot.lane.b32.xlu1 %v2742_v25, %s2492_s10  ;;  %v2973_v24 = vld [vmem:[%s2588_s8 + $0xa9] sm:$0xff]  ;;  %v2976_v25 = vld [vmem:[%s2588_s8 + $0xb1] sm:$0xff] }
  0xb5   : > { %501 = vrot.lane.b32.xlu2 %v2780_v29, %s2492_s10 }
  0xb6   : > { %v347_v52 = vpop.permute.xlu0 %346  ;;  %v349_v53 = vpop.permute.xlu1 %348 }
  0xb7   : > { %428 = vst.msk [vmem:[#allocation2 + $0x78] sm:$0xff] %vm412_vm1, %v347_v52  ;;  %v369_v54 = vpop.permute.xlu2 %368 }
  0xb8   : > { %429 = vst.msk [vmem:[#allocation2 + $0x80] sm:$0xff] %vm412_vm1, %v349_v53 }
  0xb9   : > { %439 = vst.msk [vmem:[#allocation2 + $0xd0] sm:$0xff] %vm412_vm1, %v369_v54  ;;  %v3063_v54 = vld [vmem:[%s2588_s8 + $0x159] sm:$0xff] }
  0xbc   : > { %503 = vrot.lane.b32.xlu0 %v2793_v30, %s2492_s10  ;;  %505 = vrot.lane.b32.xlu1 %v2796_v31, %s2492_s10  ;;  %v2991_v30 = vld [vmem:[%s2588_s8 + $0xc9] sm:$0xff]  ;;  %v2994_v31 = vld [vmem:[%s2588_s8 + $0xd9] sm:$0xff] }
  0xbd   : > { %507 = vrot.lane.b32.xlu2 %v249_v55, %s2492_s10  ;;  %v3066_v55 = vld [vmem:[%s2588_s8 + $0x169] sm:$0xff] }
  0xbe   : > { %v353_v56 = vpop.permute.xlu0 %352  ;;  %v355_v57 = vpop.permute.xlu1 %354 }
  0xbf   : > { %431 = vst.msk [vmem:[#allocation2 + $0x90] sm:$0xff] %vm412_vm1, %v353_v56  ;;  %v375_v60 = vpop.permute.xlu2 %374 }
  0xc0   : > { %432 = vst.msk [vmem:[#allocation2 + $0x98] sm:$0xff] %vm412_vm1, %v355_v57  ;;  %v3074_v57 = vld [vmem:[%s2588_s8 + $0x171] sm:$0xff] }
  0xc1   : > { %442 = vst.msk [vmem:[#allocation2 + $0xe8] sm:$0xff] %vm412_vm1, %v375_v60 }
  0xc4   : > { %509 = vrot.lane.b32.xlu0 %v250_v58, %s2492_s10  ;;  %644 = vrot.lane.b32.xlu1 %v576_v59, %s2493_s11 }
  0xc5   : > { %646 = vrot.lane.b32.xlu2 %v577_v61, %s2493_s11 }
  0xc6   : > { %v359_v62 = vpop.permute.xlu0 %358  ;;  %v361_v63 = vpop.permute.xlu1 %360 }
  0xc7   : > { %434 = vst.msk [vmem:[#allocation2 + $0xa8] sm:$0xff] %vm412_vm1, %v359_v62  ;;  %v448_v2 = vpop.permute.xlu2 %447 }
  0xc8   : > { %435 = vst.msk [vmem:[#allocation2 + $0xb0] sm:$0xff] %vm412_vm1, %v361_v63 }
  0xc9   : > { %544 = vst.msk [vmem:[#allocation2] sm:$0xff] %vm543_vm2, %v448_v2 }
  0xcc   : > { %648 = vrot.lane.b32.xlu0 %v2901_v0, %s2493_s11  ;;  %650 = vrot.lane.b32.xlu1 %v2904_v1, %s2493_s11 }
  0xcd   : > { %652 = vrot.lane.b32.xlu2 %v2912_v3, %s2493_s11 }
  0xce   : > { %v365_v4 = vpop.permute.xlu0 %364  ;;  %v367_v5 = vpop.permute.xlu1 %366 }
  0xcf   : > { %437 = vst.msk [vmem:[#allocation2 + $0xc0] sm:$0xff] %vm412_vm1, %v365_v4  ;;  %v454_v8 = vpop.permute.xlu2 %453 }
  0xd0   : > { %438 = vst.msk [vmem:[#allocation2 + $0xc8] sm:$0xff] %vm412_vm1, %v367_v5 }
  0xd1   : > { %547 = vst.msk [vmem:[#allocation2 + $0x18] sm:$0xff] %vm543_vm2, %v454_v8 }
  0xd4   : > { %654 = vrot.lane.b32.xlu0 %v2919_v6, %s2493_s11  ;;  %656 = vrot.lane.b32.xlu1 %v2922_v7, %s2493_s11 }
  0xd5   : > { %658 = vrot.lane.b32.xlu2 %v2930_v9, %s2493_s11 }
  0xd6   : > { %v371_v10 = vpop.permute.xlu0 %370  ;;  %v373_v11 = vpop.permute.xlu1 %372 }
  0xd7   : > { %440 = vst.msk [vmem:[#allocation2 + $0xd8] sm:$0xff] %vm412_vm1, %v371_v10  ;;  %v460_v14 = vpop.permute.xlu2 %459 }
  0xd8   : > { %441 = vst.msk [vmem:[#allocation2 + $0xe0] sm:$0xff] %vm412_vm1, %v373_v11 }
  0xd9   : > { %550 = vst.msk [vmem:[#allocation2 + $0x30] sm:$0xff] %vm543_vm2, %v460_v14 }
  0xdc   : > { %660 = vrot.lane.b32.xlu0 %v2937_v12, %s2493_s11  ;;  %662 = vrot.lane.b32.xlu1 %v2940_v13, %s2493_s11 }
  0xdd   : > { %664 = vrot.lane.b32.xlu2 %v2948_v15, %s2493_s11 }
  0xde   : > { %v377_v16 = vpop.permute.xlu0 %376  ;;  %v379_v17 = vpop.permute.xlu1 %378 }
  0xdf   : > { %443 = vst.msk [vmem:[#allocation2 + $0xf0] sm:$0xff] %vm412_vm1, %v377_v16  ;;  %v466_v20 = vpop.permute.xlu2 %465 }
  0xe0   : > { %444 = vst.msk [vmem:[#allocation2 + $0xf8] sm:$0xff] %vm412_vm1, %v379_v17 }
  0xe1   : > { %553 = vst.msk [vmem:[#allocation2 + $0x48] sm:$0xff] %vm543_vm2, %v466_v20 }
  0xe4   : > { %666 = vrot.lane.b32.xlu0 %v2955_v18, %s2493_s11  ;;  %668 = vrot.lane.b32.xlu1 %v2958_v19, %s2493_s11 }
  0xe5   : > { %670 = vrot.lane.b32.xlu2 %v2966_v21, %s2493_s11 }
  0xe6   : > { %v450_v22 = vpop.permute.xlu0 %449  ;;  %v452_v23 = vpop.permute.xlu1 %451 }
  0xe7   : > { %545 = vst.msk [vmem:[#allocation2 + $0x8] sm:$0xff] %vm543_vm2, %v450_v22  ;;  %v472_v26 = vpop.permute.xlu2 %471 }
  0xe8   : > { %546 = vst.msk [vmem:[#allocation2 + $0x10] sm:$0xff] %vm543_vm2, %v452_v23 }
  0xe9   : > { %556 = vst.msk [vmem:[#allocation2 + $0x60] sm:$0xff] %vm543_vm2, %v472_v26 }
  0xec   : > { %672 = vrot.lane.b32.xlu0 %v2973_v24, %s2493_s11  ;;  %674 = vrot.lane.b32.xlu1 %v2976_v25, %s2493_s11 }
  0xed   : > { %676 = vrot.lane.b32.xlu2 %v2984_v27, %s2493_s11 }
  0xee   : > { %v456_v28 = vpop.permute.xlu0 %455  ;;  %v458_v29 = vpop.permute.xlu1 %457 }
  0xef   : > { %548 = vst.msk [vmem:[#allocation2 + $0x20] sm:$0xff] %vm543_vm2, %v456_v28  ;;  %v478_v32 = vpop.permute.xlu2 %477 }
  0xf0   : > { %549 = vst.msk [vmem:[#allocation2 + $0x28] sm:$0xff] %vm543_vm2, %v458_v29 }
  0xf1   : > { %559 = vst.msk [vmem:[#allocation2 + $0x78] sm:$0xff] %vm543_vm2, %v478_v32 }
  0xf4   : > { %678 = vrot.lane.b32.xlu0 %v2991_v30, %s2493_s11  ;;  %680 = vrot.lane.b32.xlu1 %v2994_v31, %s2493_s11 }
  0xf5   : > { %682 = vrot.lane.b32.xlu2 %v3002_v33, %s2493_s11 }
  0xf6   : > { %v462_v34 = vpop.permute.xlu0 %461  ;;  %v464_v35 = vpop.permute.xlu1 %463 }
  0xf7   : > { %551 = vst.msk [vmem:[#allocation2 + $0x38] sm:$0xff] %vm543_vm2, %v462_v34  ;;  %v484_v38 = vpop.permute.xlu2 %483 }
  0xf8   : > { %552 = vst.msk [vmem:[#allocation2 + $0x40] sm:$0xff] %vm543_vm2, %v464_v35 }
  0xf9   : > { %562 = vst.msk [vmem:[#allocation2 + $0x90] sm:$0xff] %vm543_vm2, %v484_v38 }
  0xfc   : > { %684 = vrot.lane.b32.xlu0 %v3009_v36, %s2493_s11  ;;  %686 = vrot.lane.b32.xlu1 %v3012_v37, %s2493_s11 }
  0xfd   : > { %688 = vrot.lane.b32.xlu2 %v3020_v39, %s2493_s11 }
  0xfe   : > { %v468_v40 = vpop.permute.xlu0 %467  ;;  %v470_v41 = vpop.permute.xlu1 %469 }
  0xff   : > { %554 = vst.msk [vmem:[#allocation2 + $0x50] sm:$0xff] %vm543_vm2, %v468_v40  ;;  %v490_v44 = vpop.permute.xlu2 %489 }
 0x100   : > { %555 = vst.msk [vmem:[#allocation2 + $0x58] sm:$0xff] %vm543_vm2, %v470_v41 }
 0x101   : > { %565 = vst.msk [vmem:[#allocation2 + $0xa8] sm:$0xff] %vm543_vm2, %v490_v44 }
 0x104   : > { %690 = vrot.lane.b32.xlu0 %v3027_v42, %s2493_s11  ;;  %692 = vrot.lane.b32.xlu1 %v3030_v43, %s2493_s11 }
 0x105   : > { %694 = vrot.lane.b32.xlu2 %v3038_v45, %s2493_s11 }
 0x106   : > { %v474_v46 = vpop.permute.xlu0 %473  ;;  %v476_v47 = vpop.permute.xlu1 %475 }
 0x107   : > { %557 = vst.msk [vmem:[#allocation2 + $0x68] sm:$0xff] %vm543_vm2, %v474_v46  ;;  %v496_v50 = vpop.permute.xlu2 %495 }
 0x108   : > { %558 = vst.msk [vmem:[#allocation2 + $0x70] sm:$0xff] %vm543_vm2, %v476_v47 }
 0x109   : > { %568 = vst.msk [vmem:[#allocation2 + $0xc0] sm:$0xff] %vm543_vm2, %v496_v50  ;;  %v3171_v50 = vld [vmem:[%s2588_s8 + $0x181] sm:$0xff] }
 0x10c   : > { %696 = vrot.lane.b32.xlu0 %v3045_v48, %s2493_s11  ;;  %698 = vrot.lane.b32.xlu1 %v3048_v49, %s2493_s11 }
 0x10d   : > { %700 = vrot.lane.b32.xlu2 %v3056_v51, %s2493_s11 }
 0x10e   : > { %v480_v52 = vpop.permute.xlu0 %479  ;;  %v482_v53 = vpop.permute.xlu1 %481 }
 0x10f   : > { %560 = vst.msk [vmem:[#allocation2 + $0x80] sm:$0xff] %vm543_vm2, %v480_v52  ;;  %v502_v56 = vpop.permute.xlu2 %501  ;;  %v3174_v52 = vld [vmem:[%s2588_s8 + $0x189] sm:$0xff] }
 0x110   : > { %561 = vst.msk [vmem:[#allocation2 + $0x88] sm:$0xff] %vm543_vm2, %v482_v53 }
 0x111   : > { %571 = vst.msk [vmem:[#allocation2 + $0xd8] sm:$0xff] %vm543_vm2, %v502_v56 }
 0x114   : > { %702 = vrot.lane.b32.xlu0 %v3063_v54, %s2493_s11  ;;  %704 = vrot.lane.b32.xlu1 %v3066_v55, %s2493_s11 }
 0x115   : > { %706 = vrot.lane.b32.xlu2 %v3074_v57, %s2493_s11  ;;  %s203_s11 = sand.u32 1, %s2473_s18  }
 0x116   : > { %v486_v58 = vpop.permute.xlu0 %485  ;;  %v488_v59 = vpop.permute.xlu1 %487  ;;  %s2132_s27 = scalar_lea.sflag [#allocation5], %s203_s11 }
 0x117   : > { %563 = vst.msk [vmem:[#allocation2 + $0x98] sm:$0xff] %vm543_vm2, %v486_v58  ;;  %v508_v60 = vpop.permute.xlu2 %507 }
 0x118   : > { %564 = vst.msk [vmem:[#allocation2 + $0xa0] sm:$0xff] %vm543_vm2, %v488_v59 }
 0x119   : > { %574 = vst.msk [vmem:[#allocation2 + $0xf0] sm:$0xff] %vm543_vm2, %v508_v60 }
 0x11c   : > { %775 = vrot.lane.b32.xlu0 %v2901_v0, %s2494_s12  ;;  %777 = vrot.lane.b32.xlu1 %v2904_v1, %s2494_s12 }
 0x11d   : > { %779 = vrot.lane.b32.xlu2 %v2912_v3, %s2494_s12 }
 0x11e   : > { %v492_v61 = vpop.permute.xlu0 %491  ;;  %v494_v62 = vpop.permute.xlu1 %493 }
 0x11f   : > { %566 = vst.msk [vmem:[#allocation2 + $0xb0] sm:$0xff] %vm543_vm2, %v492_v61  ;;  %v647_v63 = vpop.permute.xlu2 %646 }
 0x120   : > { %567 = vst.msk [vmem:[#allocation2 + $0xb8] sm:$0xff] %vm543_vm2, %v494_v62 }
 0x121   : > { %742 = vst.msk [vmem:[#allocation2 + $0x8] sm:$0xff] %vm740_vm3, %v647_v63  ;;  %v1035_v63 = vld [vmem:[%s2588_s8 + $0x2] sm:$0xff] }
 0x124   : > { %781 = vrot.lane.b32.xlu0 %v2919_v6, %s2494_s12  ;;  %783 = vrot.lane.b32.xlu1 %v2922_v7, %s2494_s12 }
 0x125   : > { %785 = vrot.lane.b32.xlu2 %v2930_v9, %s2494_s12 }
 0x126   : > { %v498_v0 = vpop.permute.xlu0 %497  ;;  %v500_v1 = vpop.permute.xlu1 %499 }
 0x127   : > { %569 = vst.msk [vmem:[#allocation2 + $0xc8] sm:$0xff] %vm543_vm2, %v498_v0  ;;  %v653_v2 = vpop.permute.xlu2 %652 }
 0x128   : > { %570 = vst.msk [vmem:[#allocation2 + $0xd0] sm:$0xff] %vm543_vm2, %v500_v1  ;;  %v1037_v1 = vld [vmem:[%s2588_s8 + $0x1a] sm:$0xff] }
 0x129   : > { %745 = vst.msk [vmem:[#allocation2 + $0x20] sm:$0xff] %vm740_vm3, %v653_v2 }
 0x12c   : > { %787 = vrot.lane.b32.xlu0 %v2937_v12, %s2494_s12  ;;  %789 = vrot.lane.b32.xlu1 %v2940_v13, %s2494_s12 }
 0x12d   : > { %791 = vrot.lane.b32.xlu2 %v2948_v15, %s2494_s12 }
 0x12e   : > { %v504_v4 = vpop.permute.xlu0 %503  ;;  %v506_v5 = vpop.permute.xlu1 %505 }
 0x12f   : > { %572 = vst.msk [vmem:[#allocation2 + $0xe0] sm:$0xff] %vm543_vm2, %v504_v4  ;;  %v659_v8 = vpop.permute.xlu2 %658 }
 0x130   : > { %573 = vst.msk [vmem:[#allocation2 + $0xe8] sm:$0xff] %vm543_vm2, %v506_v5  ;;  %v3285_v5 = vld [vmem:[%s2588_s8 + $0xca] sm:$0xff] }
 0x131   : > { %748 = vst.msk [vmem:[#allocation2 + $0x38] sm:$0xff] %vm740_vm3, %v659_v8  ;;  %v3288_v8 = vld [vmem:[%s2588_s8 + $0x32] sm:$0xff] }
 0x134   : > { %793 = vrot.lane.b32.xlu0 %v2955_v18, %s2494_s12  ;;  %795 = vrot.lane.b32.xlu1 %v2958_v19, %s2494_s12 }
 0x135   : > { %797 = vrot.lane.b32.xlu2 %v2966_v21, %s2494_s12 }
 0x136   : > { %v510_v10 = vpop.permute.xlu0 %509  ;;  %v645_v11 = vpop.permute.xlu1 %644 }
 0x137   : > { %575 = vst.msk [vmem:[#allocation2 + $0xf8] sm:$0xff] %vm543_vm2, %v510_v10  ;;  %v665_v14 = vpop.permute.xlu2 %664 }
 0x138   : > { %741 = vst.msk [vmem:[#allocation2] sm:$0xff] %vm740_vm3, %v645_v11  ;;  %v3296_v11 = vld [vmem:[%s2588_s8 + $0xe2] sm:$0xff] }
 0x139   : > { %751 = vst.msk [vmem:[#allocation2 + $0x50] sm:$0xff] %vm740_vm3, %v665_v14 }
 0x13c   : > { %799 = vrot.lane.b32.xlu0 %v2973_v24, %s2494_s12  ;;  %801 = vrot.lane.b32.xlu1 %v2976_v25, %s2494_s12 }
 0x13d   : > { %803 = vrot.lane.b32.xlu2 %v2984_v27, %s2494_s12 }
 0x13e   : > { %v649_v16 = vpop.permute.xlu0 %648  ;;  %v651_v17 = vpop.permute.xlu1 %650 }
 0x13f   : > { %743 = vst.msk [vmem:[#allocation2 + $0x10] sm:$0xff] %vm740_vm3, %v649_v16  ;;  %v671_v20 = vpop.permute.xlu2 %670 }
 0x140   : > { %744 = vst.msk [vmem:[#allocation2 + $0x18] sm:$0xff] %vm740_vm3, %v651_v17  ;;  %v3303_v17 = vld [vmem:[%s2588_s8 + $0xfa] sm:$0xff] }
 0x141   : > { %754 = vst.msk [vmem:[#allocation2 + $0x68] sm:$0xff] %vm740_vm3, %v671_v20  ;;  %v1036_v20 = vld [vmem:[%s2588_s8 + $0xa] sm:$0xff] }
 0x144   : > { %805 = vrot.lane.b32.xlu0 %v2991_v30, %s2494_s12  ;;  %807 = vrot.lane.b32.xlu1 %v2994_v31, %s2494_s12 }
 0x145   : > { %809 = vrot.lane.b32.xlu2 %v3002_v33, %s2494_s12 }
 0x146   : > { %v655_v22 = vpop.permute.xlu0 %654  ;;  %v657_v23 = vpop.permute.xlu1 %656 }
 0x147   : > { %746 = vst.msk [vmem:[#allocation2 + $0x28] sm:$0xff] %vm740_vm3, %v655_v22  ;;  %v677_v26 = vpop.permute.xlu2 %676 }
 0x148   : > { %747 = vst.msk [vmem:[#allocation2 + $0x30] sm:$0xff] %vm740_vm3, %v657_v23  ;;  %v1038_v23 = vld [vmem:[%s2588_s8 + $0x22] sm:$0xff] }
 0x149   : > { %757 = vst.msk [vmem:[#allocation2 + $0x80] sm:$0xff] %vm740_vm3, %v677_v26 }
 0x14c   : > { %811 = vrot.lane.b32.xlu0 %v3009_v36, %s2494_s12  ;;  %813 = vrot.lane.b32.xlu1 %v3012_v37, %s2494_s12 }
 0x14d   : > { %815 = vrot.lane.b32.xlu2 %v3020_v39, %s2494_s12 }
 0x14e   : > { %v661_v28 = vpop.permute.xlu0 %660  ;;  %v663_v29 = vpop.permute.xlu1 %662 }
 0x14f   : > { %749 = vst.msk [vmem:[#allocation2 + $0x40] sm:$0xff] %vm740_vm3, %v661_v28  ;;  %v683_v32 = vpop.permute.xlu2 %682 }
 0x150   : > { %750 = vst.msk [vmem:[#allocation2 + $0x48] sm:$0xff] %vm740_vm3, %v663_v29  ;;  %v3315_v29 = vld [vmem:[%s2588_s8 + $0x3a] sm:$0xff] }
 0x151   : > { %760 = vst.msk [vmem:[#allocation2 + $0x98] sm:$0xff] %vm740_vm3, %v683_v32 }
 0x154   : > { %817 = vrot.lane.b32.xlu0 %v3027_v42, %s2494_s12  ;;  %819 = vrot.lane.b32.xlu1 %v3030_v43, %s2494_s12 }
 0x155   : > { %821 = vrot.lane.b32.xlu2 %v3038_v45, %s2494_s12 }
 0x156   : > { %v667_v34 = vpop.permute.xlu0 %666  ;;  %v669_v35 = vpop.permute.xlu1 %668 }
 0x157   : > { %752 = vst.msk [vmem:[#allocation2 + $0x58] sm:$0xff] %vm740_vm3, %v667_v34  ;;  %v689_v38 = vpop.permute.xlu2 %688 }
 0x158   : > { %753 = vst.msk [vmem:[#allocation2 + $0x60] sm:$0xff] %vm740_vm3, %v669_v35 }
 0x159   : > { %763 = vst.msk [vmem:[#allocation2 + $0xb0] sm:$0xff] %vm740_vm3, %v689_v38  ;;  %v3327_v38 = vld [vmem:[%s2588_s8 + $0x10a] sm:$0xff] }
 0x15c   : > { %823 = vrot.lane.b32.xlu0 %v3045_v48, %s2494_s12  ;;  %825 = vrot.lane.b32.xlu1 %v3048_v49, %s2494_s12 }
 0x15d   : > { %827 = vrot.lane.b32.xlu2 %v3056_v51, %s2494_s12 }
 0x15e   : > { %v673_v40 = vpop.permute.xlu0 %672  ;;  %v675_v41 = vpop.permute.xlu1 %674 }
 0x15f   : > { %755 = vst.msk [vmem:[#allocation2 + $0x70] sm:$0xff] %vm740_vm3, %v673_v40  ;;  %v695_v44 = vpop.permute.xlu2 %694 }
 0x160   : > { %756 = vst.msk [vmem:[#allocation2 + $0x78] sm:$0xff] %vm740_vm3, %v675_v41 }
 0x161   : > { %766 = vst.msk [vmem:[#allocation2 + $0xc8] sm:$0xff] %vm740_vm3, %v695_v44 }
 0x164   : > { %829 = vrot.lane.b32.xlu0 %v3063_v54, %s2494_s12  ;;  %831 = vrot.lane.b32.xlu1 %v3066_v55, %s2494_s12 }
 0x165   : > { %833 = vrot.lane.b32.xlu2 %v3074_v57, %s2494_s12 }
 0x166   : > { %v679_v46 = vpop.permute.xlu0 %678  ;;  %v681_v47 = vpop.permute.xlu1 %680 }
 0x167   : > { %758 = vst.msk [vmem:[#allocation2 + $0x88] sm:$0xff] %vm740_vm3, %v679_v46  ;;  %v701_v53 = vpop.permute.xlu2 %700  ;;  %v3338_v46 = vld [vmem:[%s2588_s8 + $0x4a] sm:$0xff] }
 0x168   : > { %759 = vst.msk [vmem:[#allocation2 + $0x90] sm:$0xff] %vm740_vm3, %v681_v47 }
 0x169   : > { %769 = vst.msk [vmem:[#allocation2 + $0xe0] sm:$0xff] %vm740_vm3, %v701_v53 }
 0x16c   : > { %835 = vrot.lane.b32.xlu0 %v3171_v50, %s2494_s12  ;;  %837 = vrot.lane.b32.xlu1 %v3174_v52, %s2494_s12  ;;  %s2230_s12 = sshll.u32 %s203_s11, 9 }
 0x16d   : > { %906 = vrot.lane.b32.xlu2 %v2912_v3, %s2495_s13 }
 0x16e   : > { %v685_v56 = vpop.permute.xlu0 %684  ;;  %v687_v58 = vpop.permute.xlu1 %686 }
 0x16f   : > { %761 = vst.msk [vmem:[#allocation2 + $0xa0] sm:$0xff] %vm740_vm3, %v685_v56  ;;  %v707_v59 = vpop.permute.xlu2 %706 }
 0x170   : > { %762 = vst.msk [vmem:[#allocation2 + $0xa8] sm:$0xff] %vm740_vm3, %v687_v58  ;;  %v3350_v58 = vld [vmem:[%s2588_s8 + $0x112] sm:$0xff] }
 0x171   : > { %772 = vst.msk [vmem:[#allocation2 + $0xf8] sm:$0xff] %vm740_vm3, %v707_v59 }
 0x174   : > { %908 = vrot.lane.b32.xlu0 %v2919_v6, %s2495_s13  ;;  %910 = vrot.lane.b32.xlu1 %v2922_v7, %s2495_s13 }
 0x175   : > { %912 = vrot.lane.b32.xlu2 %v2930_v9, %s2495_s13 }
 0x176   : > { %v691_v60 = vpop.permute.xlu0 %690  ;;  %v693_v61 = vpop.permute.xlu1 %692 }
 0x177   : > { %764 = vst.msk [vmem:[#allocation2 + $0xb8] sm:$0xff] %vm740_vm3, %v691_v60  ;;  %v780_v3 = vpop.permute.xlu2 %779 }
 0x178   : > { %765 = vst.msk [vmem:[#allocation2 + $0xc0] sm:$0xff] %vm740_vm3, %v693_v61 }
 0x179   : > { %874 = vst.msk [vmem:[#allocation2 + $0x10] sm:$0xff] %vm871_vm4, %v780_v3  ;;  %v3361_v3 = vld [vmem:[%s2588_s8 + $0x52] sm:$0xff] }
 0x17c   : > { %914 = vrot.lane.b32.xlu0 %v2937_v12, %s2495_s13  ;;  %916 = vrot.lane.b32.xlu1 %v2940_v13, %s2495_s13 }
 0x17d   : > { %918 = vrot.lane.b32.xlu2 %v2948_v15, %s2495_s13 }
 0x17e   : > { %v697_v6 = vpop.permute.xlu0 %696  ;;  %v699_v7 = vpop.permute.xlu1 %698 }
 0x17f   : > { %767 = vst.msk [vmem:[#allocation2 + $0xd0] sm:$0xff] %vm740_vm3, %v697_v6  ;;  %v786_v9 = vpop.permute.xlu2 %785 }
 0x180   : > { %768 = vst.msk [vmem:[#allocation2 + $0xd8] sm:$0xff] %vm740_vm3, %v699_v7 }
 0x181   : > { %877 = vst.msk [vmem:[#allocation2 + $0x28] sm:$0xff] %vm871_vm4, %v786_v9 }
 0x184   : > { %920 = vrot.lane.b32.xlu0 %v2955_v18, %s2495_s13  ;;  %922 = vrot.lane.b32.xlu1 %v2958_v19, %s2495_s13 }
 0x185   : > { %924 = vrot.lane.b32.xlu2 %v2966_v21, %s2495_s13 }
 0x186   : > { %v703_v12 = vpop.permute.xlu0 %702  ;;  %v705_v13 = vpop.permute.xlu1 %704 }
 0x187   : > { %770 = vst.msk [vmem:[#allocation2 + $0xe8] sm:$0xff] %vm740_vm3, %v703_v12  ;;  %v792_v15 = vpop.permute.xlu2 %791  ;;  %v3373_v12 = vld [vmem:[%s2588_s8 + $0x122] sm:$0xff] }
 0x188   : > { %771 = vst.msk [vmem:[#allocation2 + $0xf0] sm:$0xff] %vm740_vm3, %v705_v13 }
 0x189   : > { %880 = vst.msk [vmem:[#allocation2 + $0x40] sm:$0xff] %vm871_vm4, %v792_v15 }
 0x18c   : > { %926 = vrot.lane.b32.xlu0 %v2973_v24, %s2495_s13  ;;  %928 = vrot.lane.b32.xlu1 %v2976_v25, %s2495_s13 }
 0x18d   : > { %930 = vrot.lane.b32.xlu2 %v2984_v27, %s2495_s13 }
 0x18e   : > { %v776_v18 = vpop.permute.xlu0 %775  ;;  %v778_v19 = vpop.permute.xlu1 %777 }
 0x18f   : > { %872 = vst.msk [vmem:[#allocation2] sm:$0xff] %vm871_vm4, %v776_v18  ;;  %v798_v21 = vpop.permute.xlu2 %797 }
 0x190   : > { %873 = vst.msk [vmem:[#allocation2 + $0x8] sm:$0xff] %vm871_vm4, %v778_v19  ;;  %v3385_v19 = vld [vmem:[%s2588_s8 + $0x62] sm:$0xff] }
 0x191   : > { %883 = vst.msk [vmem:[#allocation2 + $0x58] sm:$0xff] %vm871_vm4, %v798_v21 }
 0x194   : > { %932 = vrot.lane.b32.xlu0 %v2991_v30, %s2495_s13  ;;  %934 = vrot.lane.b32.xlu1 %v2994_v31, %s2495_s13 }
 0x195   : > { %936 = vrot.lane.b32.xlu2 %v3002_v33, %s2495_s13 }
 0x196   : > { %v782_v24 = vpop.permute.xlu0 %781  ;;  %v784_v25 = vpop.permute.xlu1 %783 }
 0x197   : > { %875 = vst.msk [vmem:[#allocation2 + $0x18] sm:$0xff] %vm871_vm4, %v782_v24  ;;  %v804_v27 = vpop.permute.xlu2 %803 }
 0x198   : > { %876 = vst.msk [vmem:[#allocation2 + $0x20] sm:$0xff] %vm871_vm4, %v784_v25 }
 0x199   : > { %886 = vst.msk [vmem:[#allocation2 + $0x70] sm:$0xff] %vm871_vm4, %v804_v27  ;;  %v3397_v27 = vld [vmem:[%s2588_s8 + $0x12a] sm:$0xff] }
 0x19c   : > { %938 = vrot.lane.b32.xlu0 %v3009_v36, %s2495_s13  ;;  %940 = vrot.lane.b32.xlu1 %v3012_v37, %s2495_s13 }
 0x19d   : > { %942 = vrot.lane.b32.xlu2 %v3020_v39, %s2495_s13 }
 0x19e   : > { %v788_v30 = vpop.permute.xlu0 %787  ;;  %v790_v31 = vpop.permute.xlu1 %789 }
 0x19f   : > { %878 = vst.msk [vmem:[#allocation2 + $0x30] sm:$0xff] %vm871_vm4, %v788_v30  ;;  %v810_v33 = vpop.permute.xlu2 %809 }
 0x1a0   : > { %879 = vst.msk [vmem:[#allocation2 + $0x38] sm:$0xff] %vm871_vm4, %v790_v31  ;;  %v1534_v31 = vld [vmem:[%s4044_s2 + $0x40] sm:$0xf] }
 0x1a1   : > { %889 = vst.msk [vmem:[#allocation2 + $0x88] sm:$0xff] %vm871_vm4, %v810_v33  ;;  %v1535_v33 = vld [vmem:[%s4044_s2 + $0x48] sm:$0xf]  ;;  %2336 = vmatpush.msk.msra.mxu2 %vm1639_vm6, %v1534_v31  ;;  %2232 = vmatpush.msk.msra.mxu0 %vm1639_vm6, %v1534_v31 }
 0x1a2   : > { %2341 = vmatpush.msk.msra.mxu3 %vm1639_vm6, %v1535_v33  ;;  %2265 = vmatpush.msk.msra.mxu1 %vm1639_vm6, %v1535_v33 }
 0x1a4   : > { %944 = vrot.lane.b32.xlu0 %v3027_v42, %s2495_s13  ;;  %946 = vrot.lane.b32.xlu1 %v3030_v43, %s2495_s13 }
 0x1a5   : > { %948 = vrot.lane.b32.xlu2 %v3038_v45, %s2495_s13  ;;  %v3258_v45 = vld [vmem:[%s2588_s8 + $0xc2] sm:$0xff] }
 0x1a6   : > { %v794_v36 = vpop.permute.xlu0 %793  ;;  %v796_v37 = vpop.permute.xlu1 %795 }
 0x1a7   : > { %881 = vst.msk [vmem:[#allocation2 + $0x48] sm:$0xff] %vm871_vm4, %v794_v36  ;;  %v816_v39 = vpop.permute.xlu2 %815 }
 0x1a8   : > { %882 = vst.msk [vmem:[#allocation2 + $0x50] sm:$0xff] %vm871_vm4, %v796_v37 }
 0x1a9   : > { %892 = vst.msk [vmem:[#allocation2 + $0xa0] sm:$0xff] %vm871_vm4, %v816_v39  ;;  %v1532_v39 = vld [vmem:[%s4044_s2 + $0x30] sm:$0xff] }
 0x1aa   : > { %2337 = vmatpush.msra.mxu2 %v1532_v39  ;;  %1658 = vmatpush.msra.mxu0 %v1532_v39 }
 0x1ac   : > { %950 = vrot.lane.b32.xlu0 %v3045_v48, %s2495_s13  ;;  %952 = vrot.lane.b32.xlu1 %v3048_v49, %s2495_s13  ;;  %v3266_v48 = vld [vmem:[%s2588_s8 + $0xda] sm:$0xff] }
 0x1ad   : > { %954 = vrot.lane.b32.xlu2 %v3056_v51, %s2495_s13 }
 0x1ae   : > { %v800_v42 = vpop.permute.xlu0 %799  ;;  %v802_v43 = vpop.permute.xlu1 %801 }
 0x1af   : > { %884 = vst.msk [vmem:[#allocation2 + $0x60] sm:$0xff] %vm871_vm4, %v800_v42  ;;  %v822_v62 = vpop.permute.xlu2 %821  ;;  %v1533_v42 = vld [vmem:[%s4044_s2 + $0x38] sm:$0xff] }
 0x1b0   : > { %885 = vst.msk [vmem:[#allocation2 + $0x68] sm:$0xff] %vm871_vm4, %v802_v43  ;;  %v1530_v43 = vld [vmem:[%s4044_s2 + $0x20] sm:$0xff]  ;;  %2342 = vmatpush.msra.mxu3 %v1533_v42  ;;  %1771 = vmatpush.msra.mxu1 %v1533_v42  ;;  %v3578_v42 = vld [vmem:[%s2588_s8 + $0xaa] sm:$0xff] }
 0x1b1   : > { %895 = vst.msk [vmem:[#allocation2 + $0xb8] sm:$0xff] %vm871_vm4, %v822_v62  ;;  %v1531_v62 = vld [vmem:[%s4044_s2 + $0x28] sm:$0xff]  ;;  %2338 = vmatpush.msra.mxu2 %v1530_v43  ;;  %1659 = vmatpush.msra.mxu0 %v1530_v43 }
 0x1b2   : > { %2343 = vmatpush.msra.mxu3 %v1531_v62  ;;  %1772 = vmatpush.msra.mxu1 %v1531_v62 }
 0x1b4   : > { %956 = vrot.lane.b32.xlu0 %v3063_v54, %s2495_s13  ;;  %1135 = vrot.lane.b32.xlu1 %v3258_v45, %s2496_s14  ;;  %v3273_v54 = vld [vmem:[%s2588_s8 + $0xf2] sm:$0xff] }
 0x1b5   : > { %1266 = vrot.lane.b32.xlu2 %v3266_v48, %s2497_s15 }
 0x1b6   : > { %v806_v49 = vpop.permute.xlu0 %805  ;;  %v808_v51 = vpop.permute.xlu1 %807 }
 0x1b7   : > { %887 = vst.msk [vmem:[#allocation2 + $0x78] sm:$0xff] %vm871_vm4, %v806_v49  ;;  %v828_v0 = vpop.permute.xlu2 %827  ;;  %v3427_v49 = vld [vmem:[%s2588_s8 + $0x6a] sm:$0xff] }
 0x1b8   : > { %888 = vst.msk [vmem:[#allocation2 + $0x80] sm:$0xff] %vm871_vm4, %v808_v51 }
 0x1b9   : > { %898 = vst.msk [vmem:[#allocation2 + $0xd0] sm:$0xff] %vm871_vm4, %v828_v0  ;;  %v1526_v0 = vld [vmem:[%s4044_s2] sm:$0xff] }
 0x1bc   : > { %1397 = vrot.lane.b32.xlu0 %v3273_v54, %s2498_s16  ;;  %1103 = vrot.lane.b32.xlu1 %v1035_v63, %s2496_s14  ;;  %v1529_v63 = vld [vmem:[%s4044_s2 + $0x18] sm:$0xff] }
 0x1bd   : > { %1234 = vrot.lane.b32.xlu2 %v1037_v1, %s2497_s15  ;;  %2344 = vmatpush.msra.mxu3 %v1529_v63 }
 0x1be   : > { %v812_v2 = vpop.permute.xlu0 %811  ;;  %v814_v4 = vpop.permute.xlu1 %813  ;;  %1773 = vmatpush.msra.mxu1 %v1529_v63 }
 0x1bf   : > { %890 = vst.msk [vmem:[#allocation2 + $0x90] sm:$0xff] %vm871_vm4, %v812_v2  ;;  %v834_v10 = vpop.permute.xlu2 %833 }
 0x1c0   : > { %891 = vst.msk [vmem:[#allocation2 + $0x98] sm:$0xff] %vm871_vm4, %v814_v4 }
 0x1c1   : > { %901 = vst.msk [vmem:[#allocation2 + $0xe8] sm:$0xff] %vm871_vm4, %v834_v10 }
 0x1c4   : > { %1137 = vrot.lane.b32.xlu0 %v3285_v5, %s2496_s14  ;;  %1365 = vrot.lane.b32.xlu1 %v3288_v8, %s2498_s16 }
 0x1c5   : > { %1268 = vrot.lane.b32.xlu2 %v3296_v11, %s2497_s15 }
 0x1c6   : > { %v818_v14 = vpop.permute.xlu0 %817  ;;  %v820_v16 = vpop.permute.xlu1 %819 }
 0x1c7   : > { %893 = vst.msk [vmem:[#allocation2 + $0xa8] sm:$0xff] %vm871_vm4, %v818_v14  ;;  %v907_v22 = vpop.permute.xlu2 %906 }
 0x1c8   : > { %894 = vst.msk [vmem:[#allocation2 + $0xb0] sm:$0xff] %vm871_vm4, %v820_v16 }
 0x1c9   : > { %1003 = vst.msk [vmem:[#allocation2] sm:$0xff] %vm1002_vm5, %v907_v22 }
 0x1cc   : > { %1399 = vrot.lane.b32.xlu0 %v3303_v17, %s2498_s16  ;;  %1105 = vrot.lane.b32.xlu1 %v1036_v20, %s2496_s14 }
 0x1cd   : > { %1236 = vrot.lane.b32.xlu2 %v1038_v23, %s2497_s15 }
 0x1ce   : > { %v824_v26 = vpop.permute.xlu0 %823  ;;  %v826_v28 = vpop.permute.xlu1 %825 }
 0x1cf   : > { %896 = vst.msk [vmem:[#allocation2 + $0xc0] sm:$0xff] %vm871_vm4, %v824_v26  ;;  %v913_v32 = vpop.permute.xlu2 %912  ;;  %v3473_v26 = vld [vmem:[%s2588_s8 + $0x142] sm:$0xff] }
 0x1d0   : > { %897 = vst.msk [vmem:[#allocation2 + $0xc8] sm:$0xff] %vm871_vm4, %v826_v28 }
 0x1d1   : > { %1006 = vst.msk [vmem:[#allocation2 + $0x18] sm:$0xff] %vm1002_vm5, %v913_v32 }
 0x1d4   : > { %1139 = vrot.lane.b32.xlu0 %v3266_v48, %s2496_s14  ;;  %1367 = vrot.lane.b32.xlu1 %v3315_v29, %s2498_s16 }
 0x1d5   : > { %1270 = vrot.lane.b32.xlu2 %v3273_v54, %s2497_s15 }
 0x1d6   : > { %v830_v34 = vpop.permute.xlu0 %829  ;;  %v832_v35 = vpop.permute.xlu1 %831 }
 0x1d7   : > { %899 = vst.msk [vmem:[#allocation2 + $0xd8] sm:$0xff] %vm871_vm4, %v830_v34  ;;  %v919_v40 = vpop.permute.xlu2 %918  ;;  %v3485_v34 = vld [vmem:[%s2588_s8 + $0x82] sm:$0xff] }
 0x1d8   : > { %900 = vst.msk [vmem:[#allocation2 + $0xe0] sm:$0xff] %vm871_vm4, %v832_v35 }
 0x1d9   : > { %1009 = vst.msk [vmem:[#allocation2 + $0x30] sm:$0xff] %vm1002_vm5, %v919_v40 }
 0x1dc   : > { %1401 = vrot.lane.b32.xlu0 %v3327_v38, %s2498_s16  ;;  %1107 = vrot.lane.b32.xlu1 %v1037_v1, %s2496_s14  ;;  %v1527_v1 = vld [vmem:[%s4044_s2 + $0x8] sm:$0xff] }
 0x1dd   : > { %1238 = vrot.lane.b32.xlu2 %v3288_v8, %s2497_s15  ;;  %2345 = vmatpush.msra.mxu3 %v1527_v1 }
 0x1de   : > { %v836_v41 = vpop.permute.xlu0 %835  ;;  %v838_v44 = vpop.permute.xlu1 %837  ;;  %1774 = vmatpush.msra.mxu1 %v1527_v1 }
 0x1df   : > { %902 = vst.msk [vmem:[#allocation2 + $0xf0] sm:$0xff] %vm871_vm4, %v836_v41  ;;  %v925_v47 = vpop.permute.xlu2 %924 }
 0x1e0   : > { %903 = vst.msk [vmem:[#allocation2 + $0xf8] sm:$0xff] %vm871_vm4, %v838_v44  ;;  %v3499_v44 = vld [vmem:[%s2588_s8 + $0x152] sm:$0xff] }
 0x1e1   : > { %1012 = vst.msk [vmem:[#allocation2 + $0x48] sm:$0xff] %vm1002_vm5, %v925_v47 }
 0x1e4   : > { %1141 = vrot.lane.b32.xlu0 %v3296_v11, %s2496_s14  ;;  %1369 = vrot.lane.b32.xlu1 %v3338_v46, %s2498_s16 }
 0x1e5   : > { %1272 = vrot.lane.b32.xlu2 %v3303_v17, %s2497_s15 }
 0x1e6   : > { %v909_v53 = vpop.permute.xlu0 %908  ;;  %v911_v56 = vpop.permute.xlu1 %910 }
 0x1e7   : > { %1004 = vst.msk [vmem:[#allocation2 + $0x8] sm:$0xff] %vm1002_vm5, %v909_v53  ;;  %v931_v59 = vpop.permute.xlu2 %930 }
 0x1e8   : > { %1005 = vst.msk [vmem:[#allocation2 + $0x10] sm:$0xff] %vm1002_vm5, %v911_v56 }
 0x1e9   : > { %1015 = vst.msk [vmem:[#allocation2 + $0x60] sm:$0xff] %vm1002_vm5, %v931_v59 }
 0x1ec   : > { %1403 = vrot.lane.b32.xlu0 %v3350_v58, %s2498_s16  ;;  %1109 = vrot.lane.b32.xlu1 %v1038_v23, %s2496_s14 }
 0x1ed   : > { %1240 = vrot.lane.b32.xlu2 %v3315_v29, %s2497_s15 }
 0x1ee   : > { %v915_v60 = vpop.permute.xlu0 %914  ;;  %v917_v61 = vpop.permute.xlu1 %916 }
 0x1ef   : > { %1007 = vst.msk [vmem:[#allocation2 + $0x20] sm:$0xff] %vm1002_vm5, %v915_v60  ;;  %v937_v6 = vpop.permute.xlu2 %936 }
 0x1f0   : > { %1008 = vst.msk [vmem:[#allocation2 + $0x28] sm:$0xff] %vm1002_vm5, %v917_v61 }
 0x1f1   : > { %1018 = vst.msk [vmem:[#allocation2 + $0x78] sm:$0xff] %vm1002_vm5, %v937_v6  ;;  %v3525_v6 = vld [vmem:[%s2588_s8 + $0x15a] sm:$0xff] }
 0x1f4   : > { %1143 = vrot.lane.b32.xlu0 %v3273_v54, %s2496_s14  ;;  %1371 = vrot.lane.b32.xlu1 %v3361_v3, %s2498_s16  ;;  %v1528_v54 = vld [vmem:[%s4044_s2 + $0x10] sm:$0xff] }
 0x1f5   : > { %1274 = vrot.lane.b32.xlu2 %v3327_v38, %s2497_s15  ;;  %2339 = vmatpush.msra.mxu2 %v1528_v54 }
 0x1f6   : > { %v921_v7 = vpop.permute.xlu0 %920  ;;  %v923_v9 = vpop.permute.xlu1 %922  ;;  %1660 = vmatpush.msra.mxu0 %v1528_v54 }
 0x1f7   : > { %1010 = vst.msk [vmem:[#allocation2 + $0x38] sm:$0xff] %vm1002_vm5, %v921_v7  ;;  %v943_v13 = vpop.permute.xlu2 %942  ;;  %2340 = vmatpush.msra.mxu2 %v1526_v0 }
 0x1f8   : > { %1011 = vst.msk [vmem:[#allocation2 + $0x40] sm:$0xff] %vm1002_vm5, %v923_v9  ;;  %1661 = vmatpush.msra.mxu0 %v1526_v0 }
 0x1f9   : > { %1021 = vst.msk [vmem:[#allocation2 + $0x90] sm:$0xff] %vm1002_vm5, %v943_v13 }
 0x1fc   : > { %1405 = vrot.lane.b32.xlu0 %v3373_v12, %s2498_s16  ;;  %1111 = vrot.lane.b32.xlu1 %v3288_v8, %s2496_s14  ;;  %v3450_v8 = vld [vmem:[%s2588_s8 + $0x13a] sm:$0xff] }
 0x1fd   : > { %1242 = vrot.lane.b32.xlu2 %v3338_v46, %s2497_s15 }
 0x1fe   : > { %v927_v15 = vpop.permute.xlu0 %926  ;;  %v929_v18 = vpop.permute.xlu1 %928 }
 0x1ff   : > { %1013 = vst.msk [vmem:[#allocation2 + $0x50] sm:$0xff] %vm1002_vm5, %v927_v15  ;;  %v949_v21 = vpop.permute.xlu2 %948 }
 0x200   : > { %1014 = vst.msk [vmem:[#allocation2 + $0x58] sm:$0xff] %vm1002_vm5, %v929_v18 }
 0x201   : > { %1024 = vst.msk [vmem:[#allocation2 + $0xa8] sm:$0xff] %vm1002_vm5, %v949_v21 }
 0x204   : > { %1145 = vrot.lane.b32.xlu0 %v3303_v17, %s2496_s14  ;;  %1373 = vrot.lane.b32.xlu1 %v3385_v19, %s2498_s16  ;;  %v3461_v17 = vld [vmem:[%s2588_s8 + $0x7a] sm:$0xff] }
 0x205   : > { %1276 = vrot.lane.b32.xlu2 %v3350_v58, %s2497_s15 }
 0x206   : > { %v933_v24 = vpop.permute.xlu0 %932  ;;  %v935_v25 = vpop.permute.xlu1 %934 }
 0x207   : > { %1016 = vst.msk [vmem:[#allocation2 + $0x68] sm:$0xff] %vm1002_vm5, %v933_v24  ;;  %v955_v30 = vpop.permute.xlu2 %954  ;;  %v3545_v24 = vld [vmem:[%s2588_s8 + $0x9a] sm:$0xff] }
 0x208   : > { %1017 = vst.msk [vmem:[#allocation2 + $0x70] sm:$0xff] %vm1002_vm5, %v935_v25 }
 0x209   : > { %1027 = vst.msk [vmem:[#allocation2 + $0xc0] sm:$0xff] %vm1002_vm5, %v955_v30 }
 0x20c   : > { %1407 = vrot.lane.b32.xlu0 %v3397_v27, %s2498_s16  ;;  %1113 = vrot.lane.b32.xlu1 %v3315_v29, %s2496_s14 }
 0x20d   : > { %1244 = vrot.lane.b32.xlu2 %v3361_v3, %s2497_s15 }
 0x20e   : > { %v939_v36 = vpop.permute.xlu0 %938  ;;  %v941_v37 = vpop.permute.xlu1 %940 }
 0x20f   : > { %1019 = vst.msk [vmem:[#allocation2 + $0x80] sm:$0xff] %vm1002_vm5, %v939_v36  ;;  %v1267_v51 = vpop.permute.xlu2 %1266 }
 0x210   : > { %1020 = vst.msk [vmem:[#allocation2 + $0x88] sm:$0xff] %vm1002_vm5, %v941_v37 }
 0x214   : > { %1147 = vrot.lane.b32.xlu0 %v3327_v38, %s2496_s14  ;;  %1375 = vrot.lane.b32.xlu1 %v3427_v49, %s2498_s16 }
 0x215   : > { %1278 = vrot.lane.b32.xlu2 %v3373_v12, %s2497_s15 }
 0x216   : > { %v945_v2 = vpop.permute.xlu0 %944  ;;  %v947_v4 = vpop.permute.xlu1 %946 }
 0x217   : > { %1022 = vst.msk [vmem:[#allocation2 + $0x98] sm:$0xff] %vm1002_vm5, %v945_v2  ;;  %v1235_v10 = vpop.permute.xlu2 %1234  ;;  %v3606_v2 = vld [vmem:[%s2588_s8 + $0xb2] sm:$0xff] }
 0x218   : > { %1023 = vst.msk [vmem:[#allocation2 + $0xa0] sm:$0xff] %vm1002_vm5, %v947_v4 }
 0x21c   : > { %1409 = vrot.lane.b32.xlu0 %v3450_v8, %s2498_s16  ;;  %1115 = vrot.lane.b32.xlu1 %v3338_v46, %s2496_s14 }
 0x21d   : > { %1246 = vrot.lane.b32.xlu2 %v3385_v19, %s2497_s15 }
 0x21e   : > { %v951_v14 = vpop.permute.xlu0 %950  ;;  %v953_v16 = vpop.permute.xlu1 %952 }
 0x21f   : > { %1025 = vst.msk [vmem:[#allocation2 + $0xb0] sm:$0xff] %vm1002_vm5, %v951_v14  ;;  %v1269_v20 = vpop.permute.xlu2 %1268  ;;  %v1067_v14 = vld [vmem:[%s2588_s8 + $0x182] sm:$0xff] }
 0x220   : > { %1026 = vst.msk [vmem:[#allocation2 + $0xb8] sm:$0xff] %vm1002_vm5, %v953_v16 }
 0x224   : > { %1149 = vrot.lane.b32.xlu0 %v3350_v58, %s2496_s14  ;;  %1377 = vrot.lane.b32.xlu1 %v3461_v17, %s2498_s16  ;;  %v3511_v58 = vld [vmem:[%s2588_s8 + $0x92] sm:$0xff] }
 0x225   : > { %1280 = vrot.lane.b32.xlu2 %v3397_v27, %s2497_s15 }
 0x226   : > { %v957_v22 = vpop.permute.xlu0 %956  ;;  %v1136_v23 = vpop.permute.xlu1 %1135 }
 0x227   : > { %1028 = vst.msk [vmem:[#allocation2 + $0xc8] sm:$0xff] %vm1002_vm5, %v957_v22  ;;  %v1237_v28 = vpop.permute.xlu2 %1236 }
 0x228   : > { %1216 = vst.msk [vmem:[#allocation2 + $0x80] sm:$0xff] %vm1199_vm7, %v1136_v23 }
 0x229   : > { %1347 = vst.msk [vmem:[#allocation2 + $0x80] sm:$0xff] %vm1330_vm8, %v1267_v51 }
 0x22c   : > { %1411 = vrot.lane.b32.xlu0 %v3473_v26, %s2498_s16  ;;  %1117 = vrot.lane.b32.xlu1 %v3361_v3, %s2496_s14 }
 0x22d   : > { %1248 = vrot.lane.b32.xlu2 %v3427_v49, %s2497_s15 }
 0x22e   : > { %v1398_v29 = vpop.permute.xlu0 %1397  ;;  %v1104_v32 = vpop.permute.xlu1 %1103 }
 0x22f   : > { %1478 = vst.msk [vmem:[#allocation2 + $0x80] sm:$0xff] %vm1461_vm9, %v1398_v29  ;;  %v1271_v35 = vpop.permute.xlu2 %1270 }
 0x230   : > { %1200 = vst.msk [vmem:[#allocation2] sm:$0xff] %vm1199_vm7, %v1104_v32 }
 0x231   : > { %1331 = vst.msk [vmem:[#allocation2] sm:$0xff] %vm1330_vm8, %v1235_v10 }
 0x234   : > { %1151 = vrot.lane.b32.xlu0 %v3373_v12, %s2496_s14  ;;  %1379 = vrot.lane.b32.xlu1 %v3485_v34, %s2498_s16 }
 0x235   : > { %1282 = vrot.lane.b32.xlu2 %v3450_v8, %s2497_s15 }
 0x236   : > { %v1138_v38 = vpop.permute.xlu0 %1137  ;;  %v1510_v40 = vld [vmem:[#allocation2 + $0x80] sm:$0xff]  ;;  %v1366_v41 = vpop.permute.xlu1 %1365 }
 0x237   : > { %1217 = vst.msk [vmem:[#allocation2 + $0x88] sm:$0xff] %vm1199_vm7, %v1138_v38  ;;  %2249 = vmatmul.msk.f32.vlgmr.msra.gmra.mxu2 %vm1542_vm10, %v1510_v40  ;;  %2282 = vmatmul.msk.f32.vlgmr.msra.gmra.mxu3 %vm1542_vm10, %v1510_v40  ;;  %v1239_v46 = vpop.permute.xlu2 %1238  ;;  %v610_v40 = vld [vmem:[%s2588_s8 + $0x199] sm:$0xff] }
 0x238   : > { %1462 = vst.msk [vmem:[#allocation2] sm:$0xff] %vm1461_vm9, %v1366_v41 }
 0x239   : > { %1348 = vst.msk [vmem:[#allocation2 + $0x88] sm:$0xff] %vm1330_vm8, %v1269_v20 }
 0x23c   : > { %1413 = vrot.lane.b32.xlu0 %v3499_v44, %s2498_s16  ;;  %1119 = vrot.lane.b32.xlu1 %v3385_v19, %s2496_s14 }
 0x23d   : > { %1250 = vrot.lane.b32.xlu2 %v3461_v17, %s2497_s15 }
 0x23e   : > { %v1400_v47 = vpop.permute.xlu0 %1399  ;;  %v1106_v53 = vpop.permute.xlu1 %1105 }
 0x23f   : > { %1479 = vst.msk [vmem:[#allocation2 + $0x88] sm:$0xff] %vm1461_vm9, %v1400_v47  ;;  %v1494_v56 = vld [vmem:[#allocation2] sm:$0xff]  ;;  %v1273_v59 = vpop.permute.xlu2 %1272 }
 0x240   : > { %1201 = vst.msk [vmem:[#allocation2 + $0x8] sm:$0xff] %vm1199_vm7, %v1106_v53  ;;  %2233 = vmatmul.msk.f32.vlgmr.msra.gmra.mxu0 %vm1542_vm10, %v1494_v56  ;;  %2266 = vmatmul.msk.f32.vlgmr.msra.gmra.mxu1 %vm1542_vm10, %v1494_v56 }
 0x241   : > { %1332 = vst.msk [vmem:[#allocation2 + $0x8] sm:$0xff] %vm1330_vm8, %v1237_v28 }
 0x244   : > { %1153 = vrot.lane.b32.xlu0 %v3397_v27, %s2496_s14  ;;  %1381 = vrot.lane.b32.xlu1 %v3511_v58, %s2498_s16 }
 0x245   : > { %1284 = vrot.lane.b32.xlu2 %v3473_v26, %s2497_s15 }
 0x246   : > { %v1140_v60 = vpop.permute.xlu0 %1139  ;;  %v1511_v61 = vld [vmem:[#allocation2 + $0x88] sm:$0xff]  ;;  %v1368_v3 = vpop.permute.xlu1 %1367 }
 0x247   : > { %1218 = vst.msk [vmem:[#allocation2 + $0x90] sm:$0xff] %vm1199_vm7, %v1140_v60  ;;  %2250 = vmatmul.msk.f32.gmra.mxu2 %vm1542_vm10, %v1511_v61  ;;  %2283 = vmatmul.msk.f32.gmra.mxu3 %vm1542_vm10, %v1511_v61  ;;  %v1241_v7 = vpop.permute.xlu2 %1240  ;;  %v1069_v60 = vld [vmem:[%s2588_s8 + $0x19a] sm:$0xff] }
 0x248   : > { %1463 = vst.msk [vmem:[#allocation2 + $0x8] sm:$0xff] %vm1461_vm9, %v1368_v3  ;;  %v611_v61 = vld [vmem:[%s2588_s8 + $0x1a1] sm:$0xff] }
 0x249   : > { %1349 = vst.msk [vmem:[#allocation2 + $0x90] sm:$0xff] %vm1330_vm8, %v1271_v35 }
 0x24c   : > { %1415 = vrot.lane.b32.xlu0 %v3525_v6, %s2498_s16  ;;  %1121 = vrot.lane.b32.xlu1 %v3427_v49, %s2496_s14  ;;  %v3587_v49 = vld [vmem:[%s2588_s8 + $0x172] sm:$0xff] }
 0x24d   : > { %958 = vrot.lane.b32.xlu2 %v3066_v55, %s2495_s13  ;;  %v3553_v55 = vld [vmem:[%s2588_s8 + $0x16a] sm:$0xff] }
 0x24e   : > { %v1402_v9 = vpop.permute.xlu0 %1401  ;;  %v1108_v12 = vpop.permute.xlu1 %1107 }
 0x24f   : > { %1480 = vst.msk [vmem:[#allocation2 + $0x90] sm:$0xff] %vm1461_vm9, %v1402_v9  ;;  %v1495_v13 = vld [vmem:[#allocation2 + $0x8] sm:$0xff]  ;;  %v1275_v15 = vpop.permute.xlu2 %1274 }
 0x250   : > { %1202 = vst.msk [vmem:[#allocation2 + $0x10] sm:$0xff] %vm1199_vm7, %v1108_v12  ;;  %2234 = vmatmul.msk.f32.gmra.mxu0 %vm1542_vm10, %v1495_v13  ;;  %2267 = vmatmul.msk.f32.gmra.mxu1 %vm1542_vm10, %v1495_v13  ;;  %v1536_v13 = vld [vmem:[%s4045_s3] sm:$0x3] }
 0x251   : > { %1333 = vst.msk [vmem:[#allocation2 + $0x10] sm:$0xff] %vm1330_vm8, %v1239_v46 }
 0x254   : > { %1252 = vrot.lane.b32.xlu0 %v3485_v34, %s2497_s15  ;;  %1155 = vrot.lane.b32.xlu1 %v3450_v8, %s2496_s14 }
 0x255   : > { %1383 = vrot.lane.b32.xlu2 %v3545_v24, %s2498_s16 }
 0x256   : > { %v1142_v18 = vpop.permute.xlu0 %1141  ;;  %v1512_v19 = vld [vmem:[#allocation2 + $0x90] sm:$0xff]  ;;  %v1370_v21 = vpop.permute.xlu1 %1369 }
 0x257   : > { %1219 = vst.msk [vmem:[#allocation2 + $0x98] sm:$0xff] %vm1199_vm7, %v1142_v18  ;;  %2251 = vmatmul.msk.f32.gmra.mxu2 %vm1542_vm10, %v1512_v19  ;;  %2284 = vmatmul.msk.f32.gmra.mxu3 %vm1542_vm10, %v1512_v19  ;;  %v1243_v25 = vpop.permute.xlu2 %1242 }
 0x258   : > { %1464 = vst.msk [vmem:[#allocation2 + $0x10] sm:$0xff] %vm1461_vm9, %v1370_v21  ;;  %v3705_v21 = vperm.slane %v1536_v13, 1 }
 0x259   : > { %1350 = vst.msk [vmem:[#allocation2 + $0x98] sm:$0xff] %vm1330_vm8, %v1273_v59 }
 0x25c   : > { %1286 = vrot.lane.b32.xlu0 %v3499_v44, %s2497_s15  ;;  %1417 = vrot.lane.b32.xlu1 %v3553_v55, %s2498_s16 }
 0x25d   : > { %1123 = vrot.lane.b32.xlu2 %v3461_v17, %s2496_s14 }
 0x25e   : > { %v1404_v27 = vpop.permute.xlu0 %1403  ;;  %v1110_v30 = vpop.permute.xlu1 %1109 }
 0x25f   : > { %1481 = vst.msk [vmem:[#allocation2 + $0x98] sm:$0xff] %vm1461_vm9, %v1404_v27  ;;  %v1496_v31 = vld [vmem:[#allocation2 + $0x10] sm:$0xff]  ;;  %v1277_v33 = vpop.permute.xlu2 %1276 }
 0x260   : > { %1203 = vst.msk [vmem:[#allocation2 + $0x18] sm:$0xff] %vm1199_vm7, %v1110_v30  ;;  %2235 = vmatmul.msk.f32.gmra.mxu0 %vm1542_vm10, %v1496_v31  ;;  %2268 = vmatmul.msk.f32.gmra.mxu1 %vm1542_vm10, %v1496_v31 }
 0x261   : > { %1334 = vst.msk [vmem:[#allocation2 + $0x18] sm:$0xff] %vm1330_vm8, %v1241_v7 }
 0x264   : > { %960 = vrot.lane.b32.xlu0 %v3074_v57, %s2495_s13  ;;  %1254 = vrot.lane.b32.xlu1 %v3511_v58, %s2497_s15 }
 0x265   : > { %1157 = vrot.lane.b32.xlu2 %v3473_v26, %s2496_s14 }
 0x266   : > { %v1144_v36 = vpop.permute.xlu0 %1143  ;;  %v1513_v37 = vld [vmem:[#allocation2 + $0x98] sm:$0xff]  ;;  %v1372_v39 = vpop.permute.xlu1 %1371 }
 0x267   : > { %1220 = vst.msk [vmem:[#allocation2 + $0xa0] sm:$0xff] %vm1199_vm7, %v1144_v36  ;;  %2252 = vmatmul.msk.f32.gmra.mxu2 %vm1542_vm10, %v1513_v37  ;;  %2285 = vmatmul.msk.f32.gmra.mxu3 %vm1542_vm10, %v1513_v37  ;;  %v1245_v57 = vpop.permute.xlu2 %1244 }
 0x268   : > { %1465 = vst.msk [vmem:[#allocation2 + $0x18] sm:$0xff] %vm1461_vm9, %v1372_v39 }
 0x269   : > { %1351 = vst.msk [vmem:[#allocation2 + $0xa0] sm:$0xff] %vm1330_vm8, %v1275_v15 }
 0x26c   : > { %1385 = vrot.lane.b32.xlu0 %v3578_v42, %s2498_s16  ;;  %1288 = vrot.lane.b32.xlu1 %v3525_v6, %s2497_s15 }
 0x26d   : > { %1419 = vrot.lane.b32.xlu2 %v3587_v49, %s2498_s16 }
 0x26e   : > { %v1406_v43 = vpop.permute.xlu0 %1405  ;;  %v1112_v62 = vpop.permute.xlu1 %1111 }
 0x26f   : > { %1482 = vst.msk [vmem:[#allocation2 + $0xa0] sm:$0xff] %vm1461_vm9, %v1406_v43  ;;  %v1497_v51 = vld [vmem:[#allocation2 + $0x18] sm:$0xff]  ;;  %v1279_v54 = vpop.permute.xlu2 %1278 }
 0x270   : > { %1204 = vst.msk [vmem:[#allocation2 + $0x20] sm:$0xff] %vm1199_vm7, %v1112_v62  ;;  %2236 = vmatmul.msk.f32.gmra.mxu0 %vm1542_vm10, %v1497_v51  ;;  %2269 = vmatmul.msk.f32.gmra.mxu1 %vm1542_vm10, %v1497_v51 }
 0x271   : > { %1335 = vst.msk [vmem:[#allocation2 + $0x20] sm:$0xff] %vm1330_vm8, %v1243_v25 }
 0x274   : > { %1125 = vrot.lane.b32.xlu0 %v3485_v34, %s2496_s14  ;;  %962 = vrot.lane.b32.xlu1 %v3171_v50, %s2495_s13 }
 0x275   : > { %1256 = vrot.lane.b32.xlu2 %v3545_v24, %s2497_s15 }
 0x276   : > { %v1146_v63 = vpop.permute.xlu0 %1145  ;;  %v1514_v0 = vld [vmem:[#allocation2 + $0xa0] sm:$0xff]  ;;  %v1374_v1 = vpop.permute.xlu1 %1373 }
 0x277   : > { %1221 = vst.msk [vmem:[#allocation2 + $0xa8] sm:$0xff] %vm1199_vm7, %v1146_v63  ;;  %2253 = vmatmul.msk.f32.gmra.mxu2 %vm1542_vm10, %v1514_v0  ;;  %2286 = vmatmul.msk.f32.gmra.mxu3 %vm1542_vm10, %v1514_v0  ;;  %v1247_v50 = vpop.permute.xlu2 %1246 }
 0x278   : > { %1466 = vst.msk [vmem:[#allocation2 + $0x20] sm:$0xff] %vm1461_vm9, %v1374_v1 }
 0x279   : > { %1352 = vst.msk [vmem:[#allocation2 + $0xa8] sm:$0xff] %vm1330_vm8, %v1277_v33 }
 0x27c   : > { %1159 = vrot.lane.b32.xlu0 %v3499_v44, %s2496_s14  ;;  %1387 = vrot.lane.b32.xlu1 %v3606_v2, %s2498_s16 }
 0x27d   : > { %1290 = vrot.lane.b32.xlu2 %v3553_v55, %s2497_s15 }
 0x27e   : > { %v1408_v4 = vpop.permute.xlu0 %1407  ;;  %v1114_v8 = vpop.permute.xlu1 %1113 }
 0x27f   : > { %1483 = vst.msk [vmem:[#allocation2 + $0xa8] sm:$0xff] %vm1461_vm9, %v1408_v4  ;;  %v1498_v10 = vld [vmem:[#allocation2 + $0x20] sm:$0xff]  ;;  %v1281_v16 = vpop.permute.xlu2 %1280 }
 0x280   : > { %1205 = vst.msk [vmem:[#allocation2 + $0x28] sm:$0xff] %vm1199_vm7, %v1114_v8  ;;  %2237 = vmatmul.msk.f32.gmra.mxu0 %vm1542_vm10, %v1498_v10  ;;  %2270 = vmatmul.msk.f32.gmra.mxu1 %vm1542_vm10, %v1498_v10 }
 0x281   : > { %1336 = vst.msk [vmem:[#allocation2 + $0x28] sm:$0xff] %vm1330_vm8, %v1245_v57 }
 0x284   : > { %1421 = vrot.lane.b32.xlu0 %v1067_v14, %s2498_s16  ;;  %1127 = vrot.lane.b32.xlu1 %v3511_v58, %s2496_s14 }
 0x285   : > { %964 = vrot.lane.b32.xlu2 %v3174_v52, %s2495_s13  ;;  %v3642_v52 = vld [vmem:[%s2588_s8 + $0x18a] sm:$0xff] }
 0x286   : > { %v1148_v17 = vpop.permute.xlu0 %1147  ;;  %v1515_v20 = vld [vmem:[#allocation2 + $0xa8] sm:$0xff]  ;;  %v1376_v22 = vpop.permute.xlu1 %1375 }
 0x287   : > { %1222 = vst.msk [vmem:[#allocation2 + $0xb0] sm:$0xff] %vm1199_vm7, %v1148_v17  ;;  %2254 = vmatmul.msk.f32.gmra.mxu2 %vm1542_vm10, %v1515_v20  ;;  %2287 = vmatmul.msk.f32.gmra.mxu3 %vm1542_vm10, %v1515_v20  ;;  %v1249_v23 = vpop.permute.xlu2 %1248 }
 0x288   : > { %1467 = vst.msk [vmem:[#allocation2 + $0x28] sm:$0xff] %vm1461_vm9, %v1376_v22 }
 0x289   : > { %1353 = vst.msk [vmem:[#allocation2 + $0xb0] sm:$0xff] %vm1330_vm8, %v1279_v54 }
 0x28c   : > { %1258 = vrot.lane.b32.xlu0 %v3578_v42, %s2497_s15  ;;  %1161 = vrot.lane.b32.xlu1 %v3525_v6, %s2496_s14 }
 0x28d   : > { %1389 = vrot.lane.b32.xlu2 %v3258_v45, %s2498_s16 }
 0x28e   : > { %v1410_v26 = vpop.permute.xlu0 %1409  ;;  %v1116_v28 = vpop.permute.xlu1 %1115 }
 0x28f   : > { %1484 = vst.msk [vmem:[#allocation2 + $0xb0] sm:$0xff] %vm1461_vm9, %v1410_v26  ;;  %v1499_v29 = vld [vmem:[#allocation2 + $0x28] sm:$0xff]  ;;  %v1283_v32 = vpop.permute.xlu2 %1282 }
 0x290   : > { %1206 = vst.msk [vmem:[#allocation2 + $0x30] sm:$0xff] %vm1199_vm7, %v1116_v28  ;;  %2238 = vmatmul.msk.f32.gmra.mxu0 %vm1542_vm10, %v1499_v29  ;;  %2271 = vmatmul.msk.f32.gmra.mxu1 %vm1542_vm10, %v1499_v29 }
 0x291   : > { %1337 = vst.msk [vmem:[#allocation2 + $0x30] sm:$0xff] %vm1330_vm8, %v1247_v50 }
 0x294   : > { %1292 = vrot.lane.b32.xlu0 %v3587_v49, %s2497_s15  ;;  %1423 = vrot.lane.b32.xlu1 %v3642_v52, %s2498_s16 }
 0x295   : > { %1129 = vrot.lane.b32.xlu2 %v3545_v24, %s2496_s14 }
 0x296   : > { %v1150_v34 = vpop.permute.xlu0 %1149  ;;  %v1516_v35 = vld [vmem:[#allocation2 + $0xb0] sm:$0xff]  ;;  %v1378_v38 = vpop.permute.xlu1 %1377 }
 0x297   : > { %1223 = vst.msk [vmem:[#allocation2 + $0xb8] sm:$0xff] %vm1199_vm7, %v1150_v34  ;;  %2255 = vmatmul.msk.f32.gmra.mxu2 %vm1542_vm10, %v1516_v35  ;;  %2288 = vmatmul.msk.f32.gmra.mxu3 %vm1542_vm10, %v1516_v35  ;;  %v1251_v41 = vpop.permute.xlu2 %1250 }
 0x298   : > { %1468 = vst.msk [vmem:[#allocation2 + $0x30] sm:$0xff] %vm1461_vm9, %v1378_v38 }
 0x299   : > { %1354 = vst.msk [vmem:[#allocation2 + $0xb8] sm:$0xff] %vm1330_vm8, %v1281_v16 }
 0x29c   : > { %966 = vrot.lane.b32.xlu0 %v610_v40, %s2495_s13  ;;  %1260 = vrot.lane.b32.xlu1 %v3606_v2, %s2497_s15 }
 0x29d   : > { %1163 = vrot.lane.b32.xlu2 %v3553_v55, %s2496_s14 }
 0x29e   : > { %v1412_v44 = vpop.permute.xlu0 %1411  ;;  %v1118_v46 = vpop.permute.xlu1 %1117 }
 0x29f   : > { %1485 = vst.msk [vmem:[#allocation2 + $0xb8] sm:$0xff] %vm1461_vm9, %v1412_v44  ;;  %v1500_v47 = vld [vmem:[#allocation2 + $0x30] sm:$0xff]  ;;  %v1285_v53 = vpop.permute.xlu2 %1284 }
 0x2a0   : > { %1207 = vst.msk [vmem:[#allocation2 + $0x38] sm:$0xff] %vm1199_vm7, %v1118_v46  ;;  %2239 = vmatmul.msk.f32.gmra.mxu0 %vm1542_vm10, %v1500_v47  ;;  %2272 = vmatmul.msk.f32.gmra.mxu1 %vm1542_vm10, %v1500_v47 }
 0x2a1   : > { %1338 = vst.msk [vmem:[#allocation2 + $0x38] sm:$0xff] %vm1330_vm8, %v1249_v23 }
 0x2a4   : > { %1391 = vrot.lane.b32.xlu0 %v3285_v5, %s2498_s16  ;;  %1294 = vrot.lane.b32.xlu1 %v1067_v14, %s2497_s15 }
 0x2a5   : > { %1425 = vrot.lane.b32.xlu2 %v1069_v60, %s2498_s16 }
 0x2a6   : > { %v1152_v56 = vpop.permute.xlu0 %1151  ;;  %v1517_v58 = vld [vmem:[#allocation2 + $0xb8] sm:$0xff]  ;;  %v1380_v59 = vpop.permute.xlu1 %1379 }
 0x2a7   : > { %1224 = vst.msk [vmem:[#allocation2 + $0xc0] sm:$0xff] %vm1199_vm7, %v1152_v56  ;;  %2256 = vmatmul.msk.f32.gmra.mxu2 %vm1542_vm10, %v1517_v58  ;;  %2289 = vmatmul.msk.f32.gmra.mxu3 %vm1542_vm10, %v1517_v58  ;;  %v959_v3 = vpop.permute.xlu2 %958 }
 0x2a8   : > { %1469 = vst.msk [vmem:[#allocation2 + $0x38] sm:$0xff] %vm1461_vm9, %v1380_v59 }
 0x2a9   : > { %1355 = vst.msk [vmem:[#allocation2 + $0xc0] sm:$0xff] %vm1330_vm8, %v1283_v32 }
 0x2aa   : > { %1029 = vst.msk [vmem:[#allocation2 + $0xd0] sm:$0xff] %vm1002_vm5, %v959_v3 }
 0x2ac   : > { %1131 = vrot.lane.b32.xlu0 %v3578_v42, %s2496_s14  ;;  %968 = vrot.lane.b32.xlu1 %v611_v61, %s2495_s13  ;;  %s1872_s13 = sld [smem:[#allocation3]] }
 0x2ad   : > { %1262 = vrot.lane.b32.xlu2 %v3258_v45, %s2497_s15  ;;  %v3703_v45 = vperm.slane %v1536_v13, 0 }
 0x2ae   : > { %v1414_v6 = vpop.permute.xlu0 %1413  ;;  %v1120_v7 = vpop.permute.xlu1 %1119 }
 0x2af   : > { %1486 = vst.msk [vmem:[#allocation2 + $0xc0] sm:$0xff] %vm1461_vm9, %v1414_v6  ;;  %v1501_v9 = vld [vmem:[#allocation2 + $0x38] sm:$0xff]  ;;  %v3690_v12 = vpop.permute.xlu2 %1383 }
 0x2b0   : > { %1208 = vst.msk [vmem:[#allocation2 + $0x40] sm:$0xff] %vm1199_vm7, %v1120_v7  ;;  %2240 = vmatmul.msk.f32.gmra.mxu0 %vm1542_vm10, %v1501_v9  ;;  %2273 = vmatmul.msk.f32.gmra.mxu1 %vm1542_vm10, %v1501_v9 }
 0x2b1   : > { %1339 = vst.msk [vmem:[#allocation2 + $0x40] sm:$0xff] %vm1330_vm8, %v1251_v41 }
 0x2b2   : > { %v3714_v55 = vstv %s1872_s13  ;;  %s2431_s13 = scalar_lea.hbm %s4046_s4, 1024 }
 0x2b4   : > { %1165 = vrot.lane.b32.xlu0 %v3587_v49, %s2496_s14  ;;  %1393 = vrot.lane.b32.xlu1 %v3266_v48, %s2498_s16  ;;  %v1070_v48 = vld [vmem:[%s2588_s8 + $0x1a2] sm:$0xff]  ;;  %s3727_s8 = scalar_lea.vmem [#allocation4], %s2230_s12 }
 0x2b5   : > { %1296 = vrot.lane.b32.xlu2 %v3642_v52, %s2497_s15 }
 0x2b6   : > { %v1154_v15 = vpop.permute.xlu0 %1153  ;;  %v1518_v18 = vld [vmem:[#allocation2 + $0xc0] sm:$0xff]  ;;  %v1382_v19 = vpop.permute.xlu1 %1381 }
 0x2b7   : > { %1225 = vst.msk [vmem:[#allocation2 + $0xc8] sm:$0xff] %vm1199_vm7, %v1154_v15  ;;  %2257 = vmatmul.msk.f32.gmra.mxu2 %vm1542_vm10, %v1518_v18  ;;  %2290 = vmatmul.msk.f32.gmra.mxu3 %vm1542_vm10, %v1518_v18  ;;  %v1124_v31 = vpop.permute.xlu2 %1123 }
 0x2b8   : > { %1470 = vst.msk [vmem:[#allocation2 + $0x40] sm:$0xff] %vm1461_vm9, %v1382_v19 }
 0x2b9   : > { %1356 = vst.msk [vmem:[#allocation2 + $0xc8] sm:$0xff] %vm1330_vm8, %v1285_v53 }
 0x2ba   : > { %v1711_v24 = vpop.f32.mrf.mxu2  ;;  %v1824_v25 = vpop.f32.mrf.mxu3  ;;  %1210 = vst.msk [vmem:[#allocation2 + $0x50] sm:$0xff] %vm1199_vm7, %v1124_v31 }
 0x2bb   : > { %v1712_v27 = vadd.f32 %v1711_v24, %v3703_v45  ;;  %v1825_v30 = vadd.f32 %v1824_v25, %v3705_v21 }
 0x2bc   : > { %1427 = vrot.lane.b32.xlu0 %v1070_v48, %s2498_s16  ;;  %1133 = vrot.lane.b32.xlu1 %v3606_v2, %s2496_s14 }
 0x2bd   : > { %vm1905_vm11 = vcmp.ge.f32.partialorder %v1712_v27, 0.0  ;;  %v1970_v33 = vmul.f32 %v3714_v55, %v1712_v27  ;;  %vm1906_vm12 = vcmp.ge.f32.partialorder %v1825_v30, 0.0  ;;  %v1971_v36 = vmul.f32 %v3714_v55, %v1825_v30  ;;  %v1663_v37 = vpop.f32.mrf.mxu0  ;;  %v1776_v39 = vpop.f32.mrf.mxu1  ;;  %1264 = vrot.lane.b32.xlu2 %v3285_v5, %s2497_s15  ;;  %s2335_s15 = sshll.u32 %s2481_s20, 9  ;;  %s2147_s20 = sshll.u32 %s3727_s8, 4  ;;  %s2148_s20 = int_to_ptr.vmem [resolvable:$true] %s2147_s20 }
 0x2be   : > { %v1416_v42 = vpop.permute.xlu0 %1415  ;;  %v1664_v57 = vadd.f32 %v1663_v37, %v3703_v45  ;;  %v1777_v43 = vadd.f32 %v1776_v39, %v3705_v21  ;;  %v1122_v62 = vpop.permute.xlu1 %1121  ;;  %s2146_s23 = scalar_lea.hbm %s4046_s4, %s2335_s15 }
 0x2bf   : > { %v2034_v49 = vsel %vm1905_vm11, %v1712_v27, %v1970_v33  ;;  %v2035_v51 = vsel %vm1906_vm12, %v1825_v30, %v1971_v36  ;;  %1487 = vst.msk [vmem:[#allocation2 + $0xc8] sm:$0xff] %vm1461_vm9, %v1416_v42  ;;  %v1502_v54 = vld [vmem:[#allocation2 + $0x40] sm:$0xff]  ;;  %v1158_v50 = vpop.permute.xlu2 %1157  ;;  %s2149_s25 = sshll.u32 %s2146_s23, 4  ;;  %s2150_s25 = int_to_ptr.hbm [resolvable:$true] %s2149_s25 }
 0x2c0   : > { %2082 = vst [vmem:[%s3727_s8 + $0x100] sm:$0xff] %v2034_v49  ;;  %vm1873_vm13 = vcmp.ge.f32.partialorder %v1664_v57, 0.0  ;;  %v1938_v63 = vmul.f32 %v3714_v55, %v1664_v57  ;;  %vm1874_vm14 = vcmp.ge.f32.partialorder %v1777_v43, 0.0  ;;  %v1939_v0 = vmul.f32 %v3714_v55, %v1777_v43  ;;  %2241 = vmatmul.msk.f32.gmra.mxu0 %vm1542_vm10, %v1502_v54  ;;  %2274 = vmatmul.msk.f32.gmra.mxu1 %vm1542_vm10, %v1502_v54  ;;  %s2425_s30 = sshra.s32 %s2150_s25, 4  ;;  %s2426_s30 = int_to_ptr.hbm [resolvable:$true] %s2425_s30 }
 0x2c1   : > { %2314 = vst [vmem:[%s3727_s8 + $0x110] sm:$0xff] %v2035_v51  ;;  %s2427_s5 = scalar_lea.hbm %s2426_s30, 512  ;;  %p2432_p1 = scmp.lt.s32.totalorder %s2426_s30, %s4046_s4 }
 0x2c2   : > { %v2002_v1 = vsel %vm1873_vm13, %v1664_v57, %v1938_v63  ;;  %v2003_v2 = vsel %vm1874_vm14, %v1777_v43, %v1939_v0  ;;  %1209 = vst.msk [vmem:[#allocation2 + $0x48] sm:$0xff] %vm1199_vm7, %v1122_v62  ;;  %p2428_p12 = scmp.ne.s32.totalorder %s2426_s30, %s2427_s5  ;;  %p2433_p2 = scmp.lt.s32.totalorder %s2431_s13, %s2427_s5 }
 0x2c3   : > { %2066 = vst [vmem:[%s3727_s8] sm:$0xff] %v2002_v1 }
 0x2c4   : > { %2298 = vst [vmem:[%s3727_s8 + $0x10] sm:$0xff] %v2003_v2  ;;  %1395 = vrot.lane.b32.xlu0 %v3296_v11, %s2498_s16  ;;  %p2429_p13 = pnand %p2428_p12, %p2568_p4  ;;  %p2434_p3 = por %p2433_p2, %p2432_p1 }
 0x2c6   : > { %v1253_v4 = vpop.permute.xlu0 %1252  ;;  %v1519_v8 = vld [vmem:[#allocation2 + $0xc8] sm:$0xff]  ;;  %v1156_v10 = vpop.permute.xlu1 %1155  ;;  %p2430_p0 = pneg %p2429_p13 }
 0x2c7   : > { %1340 = vst.msk [vmem:[#allocation2 + $0x48] sm:$0xff] %vm1330_vm8, %v1253_v4  ;;  %2258 = vmatmul.msk.f32.gmra.mxu2 %vm1542_vm10, %v1519_v8  ;;  %2291 = vmatmul.msk.f32.gmra.mxu3 %vm1542_vm10, %v1519_v8  ;;  %v3750_v17 = vpop.permute.xlu2 %1419 }
 0x2c8   : > { %1226 = vst.msk [vmem:[#allocation2 + $0xd0] sm:$0xff] %vm1199_vm7, %v1156_v10  ;;  %p2435_p5 = pnand %p2434_p3, %p2430_p0 }
 0x2c9   : > { %1471 = vst.msk [vmem:[#allocation2 + $0x48] sm:$0xff] %vm1461_vm9, %v3690_v12 }
 0x2ca   : > { %v1714_v5 = vpop.f32.mrf.mxu2  ;;  %v1827_v14 = vpop.f32.mrf.mxu3 }
 0x2cb   : > { %v1715_v16 = vadd.f32 %v1714_v5, %v3703_v45  ;;  %v1828_v11 = vadd.f32 %v1827_v14, %v3705_v21 }
 0x2cd   : > { %vm1907_vm15 = vcmp.ge.f32.partialorder %v1715_v16, 0.0  ;;  %v1972_v20 = vmul.f32 %v3714_v55, %v1715_v16  ;;  %vm1908_vm0 = vcmp.ge.f32.partialorder %v1828_v11, 0.0  ;;  %v1973_v22 = vmul.f32 %v3714_v55, %v1828_v11  ;;  %v1666_v23 = vpop.f32.mrf.mxu0  ;;  %v1779_v26 = vpop.f32.mrf.mxu1 }
 0x2ce   : > { %v1287_v28 = vpop.permute.xlu0 %1286  ;;  %v1667_v29 = vadd.f32 %v1666_v23, %v3703_v45  ;;  %v1780_v52 = vadd.f32 %v1779_v26, %v3705_v21  ;;  %v1418_v32 = vpop.permute.xlu1 %1417 }
 0x2cf   : > { %v2036_v34 = vsel %vm1907_vm15, %v1715_v16, %v1972_v20  ;;  %v2037_v35 = vsel %vm1908_vm0, %v1828_v11, %v1973_v22  ;;  %1357 = vst.msk [vmem:[#allocation2 + $0xd0] sm:$0xff] %vm1330_vm8, %v1287_v28  ;;  %v1257_v47 = vpop.permute.xlu2 %1256 }
 0x2d0   : > { %2083 = vst [vmem:[%s3727_s8 + $0x108] sm:$0xff] %v2036_v34  ;;  %vm1875_vm1 = vcmp.ge.f32.partialorder %v1667_v29, 0.0  ;;  %v1940_v38 = vmul.f32 %v3714_v55, %v1667_v29  ;;  %vm1876_vm2 = vcmp.ge.f32.partialorder %v1780_v52, 0.0  ;;  %v1941_v40 = vmul.f32 %v3714_v55, %v1780_v52  ;;  %v1503_v41 = vld [vmem:[#allocation2 + $0x48] sm:$0xff] }
 0x2d1   : > { %2315 = vst [vmem:[%s3727_s8 + $0x118] sm:$0xff] %v2037_v35  ;;  %2242 = vmatmul.msk.f32.gmra.mxu0 %vm1542_vm10, %v1503_v41  ;;  %2275 = vmatmul.msk.f32.gmra.mxu1 %vm1542_vm10, %v1503_v41 }
 0x2d2   : > { %v2004_v44 = vsel %vm1875_vm1, %v1667_v29, %v1940_v38  ;;  %v2005_v46 = vsel %vm1876_vm2, %v1780_v52, %v1941_v40  ;;  %1488 = vst.msk [vmem:[#allocation2 + $0xd0] sm:$0xff] %vm1461_vm9, %v1418_v32 }
 0x2d3   : > { %2067 = vst [vmem:[%s3727_s8 + $0x8] sm:$0xff] %v2004_v44 }
 0x2d4   : > { %2299 = vst [vmem:[%s3727_s8 + $0x18] sm:$0xff] %v2005_v46 }
 0x2d6   : > { %v961_v53 = vpop.permute.xlu0 %960  ;;  %v1255_v56 = vpop.permute.xlu1 %1254 }
 0x2d7   : > { %1030 = vst.msk [vmem:[#allocation2 + $0xd8] sm:$0xff] %vm1002_vm5, %v961_v53  ;;  %v3773_v6 = vpop.permute.xlu2 %1290 }
 0x2d8   : > { %1341 = vst.msk [vmem:[#allocation2 + $0x50] sm:$0xff] %vm1330_vm8, %v1255_v56 }
 0x2d9   : > { %1227 = vst.msk [vmem:[#allocation2 + $0xd8] sm:$0xff] %vm1199_vm7, %v1158_v50  ;;  %v1520_v58 = vld [vmem:[#allocation2 + $0xd0] sm:$0xff] }
 0x2da   : > { %v1717_v59 = vpop.f32.mrf.mxu2  ;;  %v1830_v60 = vpop.f32.mrf.mxu3  ;;  %2259 = vmatmul.msk.f32.gmra.mxu2 %vm1542_vm10, %v1520_v58  ;;  %2292 = vmatmul.msk.f32.gmra.mxu3 %vm1542_vm10, %v1520_v58 }
 0x2db   : > { %v1718_v61 = vadd.f32 %v1717_v59, %v3703_v45  ;;  %v1831_v3 = vadd.f32 %v1830_v60, %v3705_v21 }
 0x2dd   : > { %vm1909_vm3 = vcmp.ge.f32.partialorder %v1718_v61, 0.0  ;;  %v1974_v7 = vmul.f32 %v3714_v55, %v1718_v61  ;;  %vm1910_vm4 = vcmp.ge.f32.partialorder %v1831_v3, 0.0  ;;  %v1975_v9 = vmul.f32 %v3714_v55, %v1831_v3  ;;  %v1669_v12 = vpop.f32.mrf.mxu0  ;;  %v1782_v13 = vpop.f32.mrf.mxu1 }
 0x2de   : > { %v1386_v15 = vpop.permute.xlu0 %1385  ;;  %v1670_v18 = vadd.f32 %v1669_v12, %v3703_v45  ;;  %v1783_v19 = vadd.f32 %v1782_v13, %v3705_v21  ;;  %v1289_v48 = vpop.permute.xlu1 %1288 }
 0x2df   : > { %v2038_v24 = vsel %vm1909_vm3, %v1718_v61, %v1974_v7  ;;  %v2039_v25 = vsel %vm1910_vm4, %v1831_v3, %v1975_v9  ;;  %1472 = vst.msk [vmem:[#allocation2 + $0x50] sm:$0xff] %vm1461_vm9, %v1386_v15  ;;  %v965_v36 = vpop.permute.xlu2 %964 }
 0x2e0   : > { %2084 = vst [vmem:[%s3727_s8 + $0x120] sm:$0xff] %v2038_v24  ;;  %vm1877_vm6 = vcmp.ge.f32.partialorder %v1670_v18, 0.0  ;;  %v1942_v27 = vmul.f32 %v3714_v55, %v1670_v18  ;;  %vm1878_vm11 = vcmp.ge.f32.partialorder %v1783_v19, 0.0  ;;  %v1943_v30 = vmul.f32 %v3714_v55, %v1783_v19 }
 0x2e1   : > { %2316 = vst [vmem:[%s3727_s8 + $0x130] sm:$0xff] %v2039_v25 }
 0x2e2   : > { %v2006_v31 = vsel %vm1877_vm6, %v1670_v18, %v1942_v27  ;;  %v2007_v33 = vsel %vm1878_vm11, %v1783_v19, %v1943_v30  ;;  %1358 = vst.msk [vmem:[#allocation2 + $0xd8] sm:$0xff] %vm1330_vm8, %v1289_v48 }
 0x2e3   : > { %2068 = vst [vmem:[%s3727_s8 + $0x20] sm:$0xff] %v2006_v31 }
 0x2e4   : > { %2300 = vst [vmem:[%s3727_s8 + $0x30] sm:$0xff] %v2007_v33 }
 0x2e5   : > { %1489 = vst.msk [vmem:[#allocation2 + $0xd8] sm:$0xff] %vm1461_vm9, %v3750_v17 }
 0x2e6   : > { %v1126_v37 = vpop.permute.xlu0 %1125  ;;  %v1504_v39 = vld [vmem:[#allocation2 + $0x50] sm:$0xff]  ;;  %v963_v42 = vpop.permute.xlu1 %962  ;;  %1032 = vst.msk [vmem:[#allocation2 + $0xe8] sm:$0xff] %vm1002_vm5, %v965_v36 }
 0x2e7   : > { %1211 = vst.msk [vmem:[#allocation2 + $0x58] sm:$0xff] %vm1199_vm7, %v1126_v37  ;;  %2243 = vmatmul.msk.f32.gmra.mxu0 %vm1542_vm10, %v1504_v39  ;;  %2276 = vmatmul.msk.f32.gmra.mxu1 %vm1542_vm10, %v1504_v39  ;;  %v3797_v51 = vpop.permute.xlu2 %1389 }
 0x2e8   : > { %1031 = vst.msk [vmem:[#allocation2 + $0xe0] sm:$0xff] %vm1002_vm5, %v963_v42 }
 0x2e9   : > { %1342 = vst.msk [vmem:[#allocation2 + $0x58] sm:$0xff] %vm1330_vm8, %v1257_v47 }
 0x2ea   : > { %v1720_v57 = vpop.f32.mrf.mxu2  ;;  %v1833_v43 = vpop.f32.mrf.mxu3 }
 0x2eb   : > { %v1721_v62 = vadd.f32 %v1720_v57, %v3703_v45  ;;  %v1834_v49 = vadd.f32 %v1833_v43, %v3705_v21 }
 0x2ec   : > { %v1521_v54 = vld [vmem:[#allocation2 + $0xd8] sm:$0xff] }
 0x2ed   : > { %vm1911_vm12 = vcmp.ge.f32.partialorder %v1721_v62, 0.0  ;;  %v1976_v63 = vmul.f32 %v3714_v55, %v1721_v62  ;;  %vm1912_vm13 = vcmp.ge.f32.partialorder %v1834_v49, 0.0  ;;  %v1977_v0 = vmul.f32 %v3714_v55, %v1834_v49  ;;  %2260 = vmatmul.msk.f32.gmra.mxu2 %vm1542_vm10, %v1521_v54  ;;  %2293 = vmatmul.msk.f32.gmra.mxu3 %vm1542_vm10, %v1521_v54  ;;  %v1672_v1 = vpop.f32.mrf.mxu0  ;;  %v1785_v2 = vpop.f32.mrf.mxu1 }
 0x2ee   : > { %v1160_v50 = vpop.permute.xlu0 %1159  ;;  %v1673_v4 = vadd.f32 %v1672_v1, %v3703_v45  ;;  %v1786_v8 = vadd.f32 %v1785_v2, %v3705_v21  ;;  %v1388_v10 = vpop.permute.xlu1 %1387 }
 0x2ef   : > { %v2040_v5 = vsel %vm1911_vm12, %v1721_v62, %v1976_v63  ;;  %v2041_v14 = vsel %vm1912_vm13, %v1834_v49, %v1977_v0  ;;  %1228 = vst.msk [vmem:[#allocation2 + $0xe0] sm:$0xff] %vm1199_vm7, %v1160_v50  ;;  %v1130_v22 = vpop.permute.xlu2 %1129 }
 0x2f0   : > { %2085 = vst [vmem:[%s3727_s8 + $0x128] sm:$0xff] %v2040_v5  ;;  %vm1879_vm14 = vcmp.ge.f32.partialorder %v1673_v4, 0.0  ;;  %v1944_v16 = vmul.f32 %v3714_v55, %v1673_v4  ;;  %vm1880_vm15 = vcmp.ge.f32.partialorder %v1786_v8, 0.0  ;;  %v1945_v11 = vmul.f32 %v3714_v55, %v1786_v8 }
 0x2f1   : > { %2317 = vst [vmem:[%s3727_s8 + $0x138] sm:$0xff] %v2041_v14 }
 0x2f2   : > { %v2008_v17 = vsel %vm1879_vm14, %v1673_v4, %v1944_v16  ;;  %v2009_v20 = vsel %vm1880_vm15, %v1786_v8, %v1945_v11  ;;  %1473 = vst.msk [vmem:[#allocation2 + $0x58] sm:$0xff] %vm1461_vm9, %v1388_v10 }
 0x2f3   : > { %2069 = vst [vmem:[%s3727_s8 + $0x28] sm:$0xff] %v2008_v17 }
 0x2f4   : > { %2301 = vst [vmem:[%s3727_s8 + $0x38] sm:$0xff] %v2009_v20 }
 0x2f5   : > { %1359 = vst.msk [vmem:[#allocation2 + $0xe0] sm:$0xff] %vm1330_vm8, %v3773_v6 }
 0x2f6   : > { %v1422_v23 = vpop.permute.xlu0 %1421  ;;  %v1128_v26 = vpop.permute.xlu1 %1127  ;;  %1213 = vst.msk [vmem:[#allocation2 + $0x68] sm:$0xff] %vm1199_vm7, %v1130_v22 }
 0x2f7   : > { %1490 = vst.msk [vmem:[#allocation2 + $0xe0] sm:$0xff] %vm1461_vm9, %v1422_v23  ;;  %v1164_v12 = vpop.permute.xlu2 %1163 }
 0x2f8   : > { %1212 = vst.msk [vmem:[#allocation2 + $0x60] sm:$0xff] %vm1199_vm7, %v1128_v26 }
 0x2f9   : > { %v1505_v28 = vld [vmem:[#allocation2 + $0x58] sm:$0xff] }
 0x2fa   : > { %v1723_v29 = vpop.f32.mrf.mxu2  ;;  %v1836_v52 = vpop.f32.mrf.mxu3  ;;  %2244 = vmatmul.msk.f32.gmra.mxu0 %vm1542_vm10, %v1505_v28  ;;  %2277 = vmatmul.msk.f32.gmra.mxu1 %vm1542_vm10, %v1505_v28 }
 0x2fb   : > { %v1724_v32 = vadd.f32 %v1723_v29, %v3703_v45  ;;  %v1837_v34 = vadd.f32 %v1836_v52, %v3705_v21 }
 0x2fd   : > { %vm1913_vm0 = vcmp.ge.f32.partialorder %v1724_v32, 0.0  ;;  %v1978_v35 = vmul.f32 %v3714_v55, %v1724_v32  ;;  %vm1914_vm1 = vcmp.ge.f32.partialorder %v1837_v34, 0.0  ;;  %v1979_v38 = vmul.f32 %v3714_v55, %v1837_v34  ;;  %v1675_v40 = vpop.f32.mrf.mxu0  ;;  %v1788_v41 = vpop.f32.mrf.mxu1 }
 0x2fe   : > { %v1259_v44 = vpop.permute.xlu0 %1258  ;;  %v1522_v46 = vld [vmem:[#allocation2 + $0xe0] sm:$0xff]  ;;  %v1676_v47 = vadd.f32 %v1675_v40, %v3703_v45  ;;  %v1789_v53 = vadd.f32 %v1788_v41, %v3705_v21  ;;  %v1162_v56 = vpop.permute.xlu1 %1161 }
 0x2ff   : > { %v2042_v58 = vsel %vm1913_vm0, %v1724_v32, %v1978_v35  ;;  %v2043_v59 = vsel %vm1914_vm1, %v1837_v34, %v1979_v38  ;;  %1343 = vst.msk [vmem:[#allocation2 + $0x60] sm:$0xff] %vm1330_vm8, %v1259_v44  ;;  %2261 = vmatmul.msk.f32.gmra.mxu2 %vm1542_vm10, %v1522_v46  ;;  %2294 = vmatmul.msk.f32.gmra.mxu3 %vm1542_vm10, %v1522_v46  ;;  %v1426_v54 = vpop.permute.xlu2 %1425 }
 0x300   : > { %2086 = vst [vmem:[%s3727_s8 + $0x140] sm:$0xff] %v2042_v58  ;;  %vm1881_vm2 = vcmp.ge.f32.partialorder %v1676_v47, 0.0  ;;  %v1946_v60 = vmul.f32 %v3714_v55, %v1676_v47  ;;  %vm1882_vm3 = vcmp.ge.f32.partialorder %v1789_v53, 0.0  ;;  %v1947_v61 = vmul.f32 %v3714_v55, %v1789_v53 }
 0x301   : > { %2318 = vst [vmem:[%s3727_s8 + $0x150] sm:$0xff] %v2043_v59 }
 0x302   : > { %v2010_v3 = vsel %vm1881_vm2, %v1676_v47, %v1946_v60  ;;  %v2011_v6 = vsel %vm1882_vm3, %v1789_v53, %v1947_v61  ;;  %1229 = vst.msk [vmem:[#allocation2 + $0xe8] sm:$0xff] %vm1199_vm7, %v1162_v56 }
 0x303   : > { %2070 = vst [vmem:[%s3727_s8 + $0x40] sm:$0xff] %v2010_v3 }
 0x304   : > { %2302 = vst [vmem:[%s3727_s8 + $0x50] sm:$0xff] %v2011_v6 }
 0x305   : > { %1474 = vst.msk [vmem:[#allocation2 + $0x60] sm:$0xff] %vm1461_vm9, %v3797_v51 }
 0x306   : > { %v1293_v7 = vpop.permute.xlu0 %1292  ;;  %v1424_v9 = vpop.permute.xlu1 %1423 }
 0x307   : > { %1360 = vst.msk [vmem:[#allocation2 + $0xe8] sm:$0xff] %vm1330_vm8, %v1293_v7  ;;  %v1263_v8 = vpop.permute.xlu2 %1262 }
 0x308   : > { %1491 = vst.msk [vmem:[#allocation2 + $0xe8] sm:$0xff] %vm1461_vm9, %v1424_v9 }
 0x30a   : > { %v1726_v13 = vpop.f32.mrf.mxu2  ;;  %v1839_v15 = vpop.f32.mrf.mxu3 }
 0x30b   : > { %v1727_v18 = vadd.f32 %v1726_v13, %v3703_v45  ;;  %v1840_v19 = vadd.f32 %v1839_v15, %v3705_v21 }
 0x30c   : > { %v1506_v48 = vld [vmem:[#allocation2 + $0x60] sm:$0xff] }
 0x30d   : > { %vm1915_vm4 = vcmp.ge.f32.partialorder %v1727_v18, 0.0  ;;  %v1980_v24 = vmul.f32 %v3714_v55, %v1727_v18  ;;  %vm1916_vm6 = vcmp.ge.f32.partialorder %v1840_v19, 0.0  ;;  %v1981_v25 = vmul.f32 %v3714_v55, %v1840_v19  ;;  %2245 = vmatmul.msk.f32.gmra.mxu0 %vm1542_vm10, %v1506_v48  ;;  %2278 = vmatmul.msk.f32.gmra.mxu1 %vm1542_vm10, %v1506_v48  ;;  %v1678_v27 = vpop.f32.mrf.mxu0  ;;  %v1791_v30 = vpop.f32.mrf.mxu1 }
 0x30e   : > { %v967_v31 = vpop.permute.xlu0 %966  ;;  %v1679_v33 = vadd.f32 %v1678_v27, %v3703_v45  ;;  %v1792_v36 = vadd.f32 %v1791_v30, %v3705_v21  ;;  %v1261_v37 = vpop.permute.xlu1 %1260 }
 0x30f   : > { %v2044_v39 = vsel %vm1915_vm4, %v1727_v18, %v1980_v24  ;;  %v2045_v42 = vsel %vm1916_vm6, %v1840_v19, %v1981_v25  ;;  %1033 = vst.msk [vmem:[#allocation2 + $0xf0] sm:$0xff] %vm1002_vm5, %v967_v31  ;;  %v1523_v57 = vld [vmem:[#allocation2 + $0xe8] sm:$0xff]  ;;  %v1297_v38 = vpop.permute.xlu2 %1296 }
 0x310   : > { %2087 = vst [vmem:[%s3727_s8 + $0x148] sm:$0xff] %v2044_v39  ;;  %vm1883_vm11 = vcmp.ge.f32.partialorder %v1679_v33, 0.0  ;;  %v1948_v43 = vmul.f32 %v3714_v55, %v1679_v33  ;;  %vm1884_vm12 = vcmp.ge.f32.partialorder %v1792_v36, 0.0  ;;  %v1949_v62 = vmul.f32 %v3714_v55, %v1792_v36  ;;  %2262 = vmatmul.msk.f32.gmra.mxu2 %vm1542_vm10, %v1523_v57  ;;  %2295 = vmatmul.msk.f32.gmra.mxu3 %vm1542_vm10, %v1523_v57 }
 0x311   : > { %2319 = vst [vmem:[%s3727_s8 + $0x158] sm:$0xff] %v2045_v42 }
 0x312   : > { %v2012_v49 = vsel %vm1883_vm11, %v1679_v33, %v1948_v43  ;;  %v2013_v51 = vsel %vm1884_vm12, %v1792_v36, %v1949_v62  ;;  %1344 = vst.msk [vmem:[#allocation2 + $0x68] sm:$0xff] %vm1330_vm8, %v1261_v37 }
 0x313   : > { %2071 = vst [vmem:[%s3727_s8 + $0x48] sm:$0xff] %v2012_v49 }
 0x314   : > { %2303 = vst [vmem:[%s3727_s8 + $0x58] sm:$0xff] %v2013_v51 }
 0x315   : > { %1230 = vst.msk [vmem:[#allocation2 + $0xf0] sm:$0xff] %vm1199_vm7, %v1164_v12 }
 0x316   : > { %v1392_v63 = vpop.permute.xlu0 %1391  ;;  %v1295_v0 = vpop.permute.xlu1 %1294 }
 0x317   : > { %1475 = vst.msk [vmem:[#allocation2 + $0x68] sm:$0xff] %vm1461_vm9, %v1392_v63  ;;  %v1265_v24 = vpop.permute.xlu2 %1264 }
 0x318   : > { %1361 = vst.msk [vmem:[#allocation2 + $0xf0] sm:$0xff] %vm1330_vm8, %v1295_v0 }
 0x319   : > { %1492 = vst.msk [vmem:[#allocation2 + $0xf0] sm:$0xff] %vm1461_vm9, %v1426_v54 }
 0x31a   : > { %v1729_v1 = vpop.f32.mrf.mxu2  ;;  %v1842_v2 = vpop.f32.mrf.mxu3 }
 0x31b   : > { %v1730_v50 = vadd.f32 %v1729_v1, %v3703_v45  ;;  %v1843_v4 = vadd.f32 %v1842_v2, %v3705_v21 }
 0x31d   : > { %vm1917_vm13 = vcmp.ge.f32.partialorder %v1730_v50, 0.0  ;;  %v1982_v10 = vmul.f32 %v3714_v55, %v1730_v50  ;;  %vm1918_vm14 = vcmp.ge.f32.partialorder %v1843_v4, 0.0  ;;  %v1983_v5 = vmul.f32 %v3714_v55, %v1843_v4  ;;  %v1681_v14 = vpop.f32.mrf.mxu0  ;;  %v1794_v16 = vpop.f32.mrf.mxu1 }
 0x31e   : > { %v1132_v11 = vpop.permute.xlu0 %1131  ;;  %v1507_v17 = vld [vmem:[#allocation2 + $0x68] sm:$0xff]  ;;  %v1682_v20 = vadd.f32 %v1681_v14, %v3703_v45  ;;  %v1795_v22 = vadd.f32 %v1794_v16, %v3705_v21  ;;  %v969_v23 = vpop.permute.xlu1 %968 }
 0x31f   : > { %v2046_v26 = vsel %vm1917_vm13, %v1730_v50, %v1982_v10  ;;  %v2047_v28 = vsel %vm1918_vm14, %v1843_v4, %v1983_v5  ;;  %1214 = vst.msk [vmem:[#allocation2 + $0x70] sm:$0xff] %vm1199_vm7, %v1132_v11  ;;  %2246 = vmatmul.msk.f32.gmra.mxu0 %vm1542_vm10, %v1507_v17  ;;  %2279 = vmatmul.msk.f32.gmra.mxu1 %vm1542_vm10, %v1507_v17 }
 0x320   : > { %2088 = vst [vmem:[%s3727_s8 + $0x160] sm:$0xff] %v2046_v26  ;;  %vm1885_vm15 = vcmp.ge.f32.partialorder %v1682_v20, 0.0  ;;  %v1950_v29 = vmul.f32 %v3714_v55, %v1682_v20  ;;  %vm1886_vm0 = vcmp.ge.f32.partialorder %v1795_v22, 0.0  ;;  %v1951_v52 = vmul.f32 %v3714_v55, %v1795_v22  ;;  %v1524_v32 = vld [vmem:[#allocation2 + $0xf0] sm:$0xff] }
 0x321   : > { %2320 = vst [vmem:[%s3727_s8 + $0x170] sm:$0xff] %v2047_v28  ;;  %2263 = vmatmul.msk.f32.gmra.mxu2 %vm1542_vm10, %v1524_v32  ;;  %2296 = vmatmul.msk.f32.gmra.mxu3 %vm1542_vm10, %v1524_v32 }
 0x322   : > { %v2014_v34 = vsel %vm1885_vm15, %v1682_v20, %v1950_v29  ;;  %v2015_v35 = vsel %vm1886_vm0, %v1795_v22, %v1951_v52  ;;  %1034 = vst.msk [vmem:[#allocation2 + $0xf8] sm:$0xff] %vm1002_vm5, %v969_v23 }
 0x323   : > { %2072 = vst [vmem:[%s3727_s8 + $0x60] sm:$0xff] %v2014_v34 }
 0x324   : > { %2304 = vst [vmem:[%s3727_s8 + $0x70] sm:$0xff] %v2015_v35 }
 0x325   : > { %1345 = vst.msk [vmem:[#allocation2 + $0x70] sm:$0xff] %vm1330_vm8, %v1263_v8 }
 0x326   : > { %v1166_v40 = vpop.permute.xlu0 %1165  ;;  %v1394_v41 = vpop.permute.xlu1 %1393 }
 0x327   : > { %1231 = vst.msk [vmem:[#allocation2 + $0xf8] sm:$0xff] %vm1199_vm7, %v1166_v40 }
 0x328   : > { %1476 = vst.msk [vmem:[#allocation2 + $0x70] sm:$0xff] %vm1461_vm9, %v1394_v41 }
 0x329   : > { %1362 = vst.msk [vmem:[#allocation2 + $0xf8] sm:$0xff] %vm1330_vm8, %v1297_v38 }
 0x32a   : > { %v1732_v44 = vpop.f32.mrf.mxu2  ;;  %v1845_v46 = vpop.f32.mrf.mxu3 }
 0x32b   : > { %v1733_v47 = vadd.f32 %v1732_v44, %v3703_v45  ;;  %v1846_v53 = vadd.f32 %v1845_v46, %v3705_v21 }
 0x32d   : > { %vm1919_vm5 = vcmp.ge.f32.partialorder %v1733_v47, 0.0  ;;  %v1984_v56 = vmul.f32 %v3714_v55, %v1733_v47  ;;  %vm1920_vm1 = vcmp.ge.f32.partialorder %v1846_v53, 0.0  ;;  %v1985_v58 = vmul.f32 %v3714_v55, %v1846_v53  ;;  %v1684_v59 = vpop.f32.mrf.mxu0  ;;  %v1797_v60 = vpop.f32.mrf.mxu1 }
 0x32e   : > { %v1428_v61 = vpop.permute.xlu0 %1427  ;;  %v1685_v3 = vadd.f32 %v1684_v59, %v3703_v45  ;;  %v1798_v6 = vadd.f32 %v1797_v60, %v3705_v21  ;;  %v1134_v13 = vpop.permute.xlu1 %1133 }
 0x32f   : > { %v2048_v7 = vsel %vm1919_vm5, %v1733_v47, %v1984_v56  ;;  %v2049_v9 = vsel %vm1920_vm1, %v1846_v53, %v1985_v58  ;;  %1493 = vst.msk [vmem:[#allocation2 + $0xf8] sm:$0xff] %vm1461_vm9, %v1428_v61  ;;  %v1508_v12 = vld [vmem:[#allocation2 + $0x70] sm:$0xff] }
 0x330   : > { %2089 = vst [vmem:[%s3727_s8 + $0x168] sm:$0xff] %v2048_v7  ;;  %vm1887_vm2 = vcmp.ge.f32.partialorder %v1685_v3, 0.0  ;;  %v1952_v15 = vmul.f32 %v3714_v55, %v1685_v3  ;;  %vm1888_vm3 = vcmp.ge.f32.partialorder %v1798_v6, 0.0  ;;  %v1953_v18 = vmul.f32 %v3714_v55, %v1798_v6  ;;  %2247 = vmatmul.msk.f32.gmra.mxu0 %vm1542_vm10, %v1508_v12  ;;  %2280 = vmatmul.msk.f32.gmra.mxu1 %vm1542_vm10, %v1508_v12 }
 0x331   : > { %2321 = vst [vmem:[%s3727_s8 + $0x178] sm:$0xff] %v2049_v9 }
 0x332   : > { %v2016_v19 = vsel %vm1887_vm2, %v1685_v3, %v1952_v15  ;;  %v2017_v48 = vsel %vm1888_vm3, %v1798_v6, %v1953_v18  ;;  %1215 = vst.msk [vmem:[#allocation2 + $0x78] sm:$0xff] %vm1199_vm7, %v1134_v13 }
 0x333   : > { %2073 = vst [vmem:[%s3727_s8 + $0x68] sm:$0xff] %v2016_v19 }
 0x334   : > { %2305 = vst [vmem:[%s3727_s8 + $0x78] sm:$0xff] %v2017_v48 }
 0x335   : > { %1346 = vst.msk [vmem:[#allocation2 + $0x78] sm:$0xff] %vm1330_vm8, %v1265_v24 }
 0x336   : > { %v1396_v25 = vpop.permute.xlu0 %1395  ;;  %v1525_v27 = vld [vmem:[#allocation2 + $0xf8] sm:$0xff] }
 0x337   : > { %1477 = vst.msk [vmem:[#allocation2 + $0x78] sm:$0xff] %vm1461_vm9, %v1396_v25  ;;  %2264 = vmatmul.msk.f32.gmra.mxu2 %vm1542_vm10, %v1525_v27  ;;  %2297 = vmatmul.msk.f32.gmra.mxu3 %vm1542_vm10, %v1525_v27 }
 0x33a   : > { %v1735_v30 = vpop.f32.mrf.mxu2  ;;  %v1848_v31 = vpop.f32.mrf.mxu3 }
 0x33b   : > { %v1736_v33 = vadd.f32 %v1735_v30, %v3703_v45  ;;  %v1849_v36 = vadd.f32 %v1848_v31, %v3705_v21 }
 0x33d   : > { %vm1921_vm7 = vcmp.ge.f32.partialorder %v1736_v33, 0.0  ;;  %v1986_v37 = vmul.f32 %v3714_v55, %v1736_v33  ;;  %vm1922_vm4 = vcmp.ge.f32.partialorder %v1849_v36, 0.0  ;;  %v1987_v39 = vmul.f32 %v3714_v55, %v1849_v36  ;;  %v1687_v42 = vpop.f32.mrf.mxu0  ;;  %v1800_v57 = vpop.f32.mrf.mxu1 }
 0x33e   : > { %v1509_v43 = vld [vmem:[#allocation2 + $0x78] sm:$0xff]  ;;  %v1688_v62 = vadd.f32 %v1687_v42, %v3703_v45  ;;  %v1801_v49 = vadd.f32 %v1800_v57, %v3705_v21 }
 0x33f   : > { %v2050_v51 = vsel %vm1921_vm7, %v1736_v33, %v1986_v37  ;;  %v2051_v54 = vsel %vm1922_vm4, %v1849_v36, %v1987_v39  ;;  %2248 = vmatmul.msk.f32.gmra.mxu0 %vm1542_vm10, %v1509_v43  ;;  %2281 = vmatmul.msk.f32.gmra.mxu1 %vm1542_vm10, %v1509_v43 }
 0x340   : > { %2090 = vst [vmem:[%s3727_s8 + $0x180] sm:$0xff] %v2050_v51  ;;  %vm1889_vm8 = vcmp.ge.f32.partialorder %v1688_v62, 0.0  ;;  %v1954_v63 = vmul.f32 %v3714_v55, %v1688_v62  ;;  %vm1890_vm9 = vcmp.ge.f32.partialorder %v1801_v49, 0.0  ;;  %v1955_v0 = vmul.f32 %v3714_v55, %v1801_v49 }
 0x341   : > { %2322 = vst [vmem:[%s3727_s8 + $0x190] sm:$0xff] %v2051_v54 }
 0x342   : > { %v2018_v1 = vsel %vm1889_vm8, %v1688_v62, %v1954_v63  ;;  %v2019_v2 = vsel %vm1890_vm9, %v1801_v49, %v1955_v0 }
 0x343   : > { %2074 = vst [vmem:[%s3727_s8 + $0x80] sm:$0xff] %v2018_v1 }
 0x344   : > { %2306 = vst [vmem:[%s3727_s8 + $0x90] sm:$0xff] %v2019_v2 }
 0x34a   : > { %v1738_v50 = vpop.f32.mrf.mxu2  ;;  %v1851_v4 = vpop.f32.mrf.mxu3 }
 0x34b   : > { %v1739_v8 = vadd.f32 %v1738_v50, %v3703_v45  ;;  %v1852_v10 = vadd.f32 %v1851_v4, %v3705_v21 }
 0x34d   : > { %vm1923_vm10 = vcmp.ge.f32.partialorder %v1739_v8, 0.0  ;;  %v1988_v5 = vmul.f32 %v3714_v55, %v1739_v8  ;;  %vm1924_vm6 = vcmp.ge.f32.partialorder %v1852_v10, 0.0  ;;  %v1989_v14 = vmul.f32 %v3714_v55, %v1852_v10 }
 0x34e   : > { %v1690_v16 = vpop.f32.mrf.mxu0  ;;  %v1803_v11 = vpop.f32.mrf.mxu1 }
 0x34f   : > { %v2052_v17 = vsel %vm1923_vm10, %v1739_v8, %v1988_v5  ;;  %v2053_v20 = vsel %vm1924_vm6, %v1852_v10, %v1989_v14  ;;  %v1691_v22 = vadd.f32 %v1690_v16, %v3703_v45  ;;  %v1804_v23 = vadd.f32 %v1803_v11, %v3705_v21 }
 0x350   : > { %2091 = vst [vmem:[%s3727_s8 + $0x188] sm:$0xff] %v2052_v17 }
 0x351   : > { %2323 = vst [vmem:[%s3727_s8 + $0x198] sm:$0xff] %v2053_v20  ;;  %vm1891_vm11 = vcmp.ge.f32.partialorder %v1691_v22, 0.0  ;;  %v1956_v26 = vmul.f32 %v3714_v55, %v1691_v22  ;;  %vm1892_vm12 = vcmp.ge.f32.partialorder %v1804_v23, 0.0  ;;  %v1957_v28 = vmul.f32 %v3714_v55, %v1804_v23 }
 0x353   : > { %v2020_v29 = vsel %vm1891_vm11, %v1691_v22, %v1956_v26  ;;  %v2021_v52 = vsel %vm1892_vm12, %v1804_v23, %v1957_v28 }
 0x354   : > { %2075 = vst [vmem:[%s3727_s8 + $0x88] sm:$0xff] %v2020_v29 }
 0x355   : > { %2307 = vst [vmem:[%s3727_s8 + $0x98] sm:$0xff] %v2021_v52 }
 0x35d   : > { %v1741_v32 = vpop.f32.mrf.mxu2  ;;  %v1854_v34 = vpop.f32.mrf.mxu3 }
 0x35e   : > { %v1742_v35 = vadd.f32 %v1741_v32, %v3703_v45  ;;  %v1855_v38 = vadd.f32 %v1854_v34, %v3705_v21 }
 0x360   : > { %vm1925_vm13 = vcmp.ge.f32.partialorder %v1742_v35, 0.0  ;;  %v1990_v40 = vmul.f32 %v3714_v55, %v1742_v35  ;;  %vm1926_vm14 = vcmp.ge.f32.partialorder %v1855_v38, 0.0  ;;  %v1991_v41 = vmul.f32 %v3714_v55, %v1855_v38 }
 0x362   : > { %v2054_v44 = vsel %vm1925_vm13, %v1742_v35, %v1990_v40  ;;  %v2055_v46 = vsel %vm1926_vm14, %v1855_v38, %v1991_v41 }
 0x363   : > { %2092 = vst [vmem:[%s3727_s8 + $0x1a0] sm:$0xff] %v2054_v44 }
 0x364   : > { %2324 = vst [vmem:[%s3727_s8 + $0x1b0] sm:$0xff] %v2055_v46  ;;  %v1693_v47 = vpop.f32.mrf.mxu0  ;;  %v1806_v53 = vpop.f32.mrf.mxu1 }
 0x365   : > { %v1694_v56 = vadd.f32 %v1693_v47, %v3703_v45  ;;  %v1807_v58 = vadd.f32 %v1806_v53, %v3705_v21 }
 0x367   : > { %vm1893_vm15 = vcmp.ge.f32.partialorder %v1694_v56, 0.0  ;;  %v1958_v59 = vmul.f32 %v3714_v55, %v1694_v56  ;;  %vm1894_vm0 = vcmp.ge.f32.partialorder %v1807_v58, 0.0  ;;  %v1959_v60 = vmul.f32 %v3714_v55, %v1807_v58 }
 0x369   : > { %v2022_v61 = vsel %vm1893_vm15, %v1694_v56, %v1958_v59  ;;  %v2023_v3 = vsel %vm1894_vm0, %v1807_v58, %v1959_v60 }
 0x36a   : > { %2076 = vst [vmem:[%s3727_s8 + $0xa0] sm:$0xff] %v2022_v61 }
 0x36b   : > { %2308 = vst [vmem:[%s3727_s8 + $0xb0] sm:$0xff] %v2023_v3 }
 0x370   : > { %v1744_v6 = vpop.f32.mrf.mxu2  ;;  %v1857_v7 = vpop.f32.mrf.mxu3 }
 0x371   : > { %v1745_v9 = vadd.f32 %v1744_v6, %v3703_v45  ;;  %v1858_v12 = vadd.f32 %v1857_v7, %v3705_v21 }
 0x373   : > { %vm1927_vm5 = vcmp.ge.f32.partialorder %v1745_v9, 0.0  ;;  %v1992_v13 = vmul.f32 %v3714_v55, %v1745_v9  ;;  %vm1928_vm1 = vcmp.ge.f32.partialorder %v1858_v12, 0.0  ;;  %v1993_v15 = vmul.f32 %v3714_v55, %v1858_v12 }
 0x375   : > { %v2056_v18 = vsel %vm1927_vm5, %v1745_v9, %v1992_v13  ;;  %v2057_v19 = vsel %vm1928_vm1, %v1858_v12, %v1993_v15 }
 0x376   : > { %2093 = vst [vmem:[%s3727_s8 + $0x1a8] sm:$0xff] %v2056_v18 }
 0x377   : > { %2325 = vst [vmem:[%s3727_s8 + $0x1b8] sm:$0xff] %v2057_v19  ;;  %v1696_v48 = vpop.f32.mrf.mxu0  ;;  %v1809_v24 = vpop.f32.mrf.mxu1 }
 0x378   : > { %v1697_v25 = vadd.f32 %v1696_v48, %v3703_v45  ;;  %v1810_v27 = vadd.f32 %v1809_v24, %v3705_v21 }
 0x37a   : > { %vm1895_vm2 = vcmp.ge.f32.partialorder %v1697_v25, 0.0  ;;  %v1960_v30 = vmul.f32 %v3714_v55, %v1697_v25  ;;  %vm1896_vm3 = vcmp.ge.f32.partialorder %v1810_v27, 0.0  ;;  %v1961_v31 = vmul.f32 %v3714_v55, %v1810_v27 }
 0x37c   : > { %v2024_v33 = vsel %vm1895_vm2, %v1697_v25, %v1960_v30  ;;  %v2025_v36 = vsel %vm1896_vm3, %v1810_v27, %v1961_v31 }
 0x37d   : > { %2077 = vst [vmem:[%s3727_s8 + $0xa8] sm:$0xff] %v2024_v33 }
 0x37e   : > { %2309 = vst [vmem:[%s3727_s8 + $0xb8] sm:$0xff] %v2025_v36 }
 0x382   : > { %v1747_v37 = vpop.f32.mrf.mxu2  ;;  %v1860_v39 = vpop.f32.mrf.mxu3 }
 0x383   : > { %v1748_v42 = vadd.f32 %v1747_v37, %v3703_v45  ;;  %v1861_v57 = vadd.f32 %v1860_v39, %v3705_v21 }
 0x385   : > { %vm1929_vm7 = vcmp.ge.f32.partialorder %v1748_v42, 0.0  ;;  %v1994_v43 = vmul.f32 %v3714_v55, %v1748_v42  ;;  %vm1930_vm4 = vcmp.ge.f32.partialorder %v1861_v57, 0.0  ;;  %v1995_v62 = vmul.f32 %v3714_v55, %v1861_v57 }
 0x387   : > { %v2058_v49 = vsel %vm1929_vm7, %v1748_v42, %v1994_v43  ;;  %v2059_v51 = vsel %vm1930_vm4, %v1861_v57, %v1995_v62 }
 0x388   : > { %2094 = vst [vmem:[%s3727_s8 + $0x1c0] sm:$0xff] %v2058_v49 }
 0x389   : > { %2326 = vst [vmem:[%s3727_s8 + $0x1d0] sm:$0xff] %v2059_v51 }
 0x38a   : > { %v1699_v54 = vpop.f32.mrf.mxu0  ;;  %v1812_v63 = vpop.f32.mrf.mxu1 }
 0x38b   : > { %v1700_v0 = vadd.f32 %v1699_v54, %v3703_v45  ;;  %v1813_v1 = vadd.f32 %v1812_v63, %v3705_v21 }
 0x38d   : > { %vm1897_vm8 = vcmp.ge.f32.partialorder %v1700_v0, 0.0  ;;  %v1962_v2 = vmul.f32 %v3714_v55, %v1700_v0  ;;  %vm1898_vm9 = vcmp.ge.f32.partialorder %v1813_v1, 0.0  ;;  %v1963_v50 = vmul.f32 %v3714_v55, %v1813_v1 }
 0x38f   : > { %v2026_v4 = vsel %vm1897_vm8, %v1700_v0, %v1962_v2  ;;  %v2027_v8 = vsel %vm1898_vm9, %v1813_v1, %v1963_v50 }
 0x390   : > { %2078 = vst [vmem:[%s3727_s8 + $0xc0] sm:$0xff] %v2026_v4 }
 0x391   : > { %2310 = vst [vmem:[%s3727_s8 + $0xd0] sm:$0xff] %v2027_v8 }
 0x393   : > { %v1750_v10 = vpop.f32.mrf.mxu2  ;;  %v1863_v5 = vpop.f32.mrf.mxu3 }
 0x394   : > { %v1751_v14 = vadd.f32 %v1750_v10, %v3703_v45  ;;  %v1864_v16 = vadd.f32 %v1863_v5, %v3705_v21 }
 0x396   : > { %vm1931_vm10 = vcmp.ge.f32.partialorder %v1751_v14, 0.0  ;;  %v1996_v11 = vmul.f32 %v3714_v55, %v1751_v14  ;;  %vm1932_vm6 = vcmp.ge.f32.partialorder %v1864_v16, 0.0  ;;  %v1997_v17 = vmul.f32 %v3714_v55, %v1864_v16 }
 0x398   : > { %v2060_v20 = vsel %vm1931_vm10, %v1751_v14, %v1996_v11  ;;  %v2061_v22 = vsel %vm1932_vm6, %v1864_v16, %v1997_v17 }
 0x399   : > { %2095 = vst [vmem:[%s3727_s8 + $0x1c8] sm:$0xff] %v2060_v20 }
 0x39a   : > { %2327 = vst [vmem:[%s3727_s8 + $0x1d8] sm:$0xff] %v2061_v22 }
 0x39c   : > { %v1702_v23 = vpop.f32.mrf.mxu0  ;;  %v1815_v26 = vpop.f32.mrf.mxu1 }
 0x39d   : > { %v1703_v28 = vadd.f32 %v1702_v23, %v3703_v45  ;;  %v1816_v29 = vadd.f32 %v1815_v26, %v3705_v21 }
 0x39f   : > { %vm1899_vm11 = vcmp.ge.f32.partialorder %v1703_v28, 0.0  ;;  %v1964_v52 = vmul.f32 %v3714_v55, %v1703_v28  ;;  %vm1900_vm12 = vcmp.ge.f32.partialorder %v1816_v29, 0.0  ;;  %v1965_v32 = vmul.f32 %v3714_v55, %v1816_v29 }
 0x3a1   : > { %v2028_v34 = vsel %vm1899_vm11, %v1703_v28, %v1964_v52  ;;  %v2029_v35 = vsel %vm1900_vm12, %v1816_v29, %v1965_v32 }
 0x3a2   : > { %2079 = vst [vmem:[%s3727_s8 + $0xc8] sm:$0xff] %v2028_v34 }
 0x3a3   : > { %2311 = vst [vmem:[%s3727_s8 + $0xd8] sm:$0xff] %v2029_v35 }
 0x3a4   : > { %v1753_v38 = vpop.f32.mrf.mxu2  ;;  %v1866_v40 = vpop.f32.mrf.mxu3 }
 0x3a5   : > { %v1754_v41 = vadd.f32 %v1753_v38, %v3703_v45  ;;  %v1867_v44 = vadd.f32 %v1866_v40, %v3705_v21 }
 0x3a7   : > { %vm1933_vm13 = vcmp.ge.f32.partialorder %v1754_v41, 0.0  ;;  %v1998_v46 = vmul.f32 %v3714_v55, %v1754_v41  ;;  %vm1934_vm14 = vcmp.ge.f32.partialorder %v1867_v44, 0.0  ;;  %v1999_v47 = vmul.f32 %v3714_v55, %v1867_v44 }
 0x3a9   : > { %v2062_v53 = vsel %vm1933_vm13, %v1754_v41, %v1998_v46  ;;  %v2063_v56 = vsel %vm1934_vm14, %v1867_v44, %v1999_v47 }
 0x3aa   : > { %2096 = vst [vmem:[%s3727_s8 + $0x1e0] sm:$0xff] %v2062_v53 }
 0x3ab   : > { %2328 = vst [vmem:[%s3727_s8 + $0x1f0] sm:$0xff] %v2063_v56 }
 0x3ad   : > { %v1705_v58 = vpop.f32.mrf.mxu0  ;;  %v1818_v59 = vpop.f32.mrf.mxu1 }
 0x3ae   : > { %v1706_v60 = vadd.f32 %v1705_v58, %v3703_v45  ;;  %v1819_v61 = vadd.f32 %v1818_v59, %v3705_v21 }
 0x3b0   : > { %vm1901_vm15 = vcmp.ge.f32.partialorder %v1706_v60, 0.0  ;;  %v1966_v3 = vmul.f32 %v3714_v55, %v1706_v60  ;;  %vm1902_vm0 = vcmp.ge.f32.partialorder %v1819_v61, 0.0  ;;  %v1967_v6 = vmul.f32 %v3714_v55, %v1819_v61 }
 0x3b2   : > { %v2030_v7 = vsel %vm1901_vm15, %v1706_v60, %v1966_v3  ;;  %v2031_v9 = vsel %vm1902_vm0, %v1819_v61, %v1967_v6 }
 0x3b3   : > { %2080 = vst [vmem:[%s3727_s8 + $0xe0] sm:$0xff] %v2030_v7 }
 0x3b4   : > { %2312 = vst [vmem:[%s3727_s8 + $0xf0] sm:$0xff] %v2031_v9 }
 0x3ba   : > { %v1756_v12 = vpop.f32.mrf.mxu2  ;;  %v1869_v13 = vpop.f32.mrf.mxu3 }
 0x3bb   : > { %v1757_v15 = vadd.f32 %v1756_v12, %v3703_v45  ;;  %v1870_v18 = vadd.f32 %v1869_v13, %v3705_v21 }
 0x3bc   : > { %v1708_v19 = vpop.f32.mrf.mxu0  ;;  %v1821_v48 = vpop.f32.mrf.mxu1 }
 0x3bd   : > { %vm1935_vm5 = vcmp.ge.f32.partialorder %v1757_v15, 0.0  ;;  %v2000_v24 = vmul.f32 %v3714_v55, %v1757_v15  ;;  %vm1936_vm1 = vcmp.ge.f32.partialorder %v1870_v18, 0.0  ;;  %v2001_v25 = vmul.f32 %v3714_v55, %v1870_v18 }
 0x3be   : > { %v1709_v27 = vadd.f32 %v1708_v19, %v3703_v45  ;;  %v1822_v30 = vadd.f32 %v1821_v48, %v3705_v21 }
 0x3bf   : > { %v2064_v31 = vsel %vm1935_vm5, %v1757_v15, %v2000_v24  ;;  %v2065_v33 = vsel %vm1936_vm1, %v1870_v18, %v2001_v25 }
 0x3c0   : > { %2097 = vst [vmem:[%s3727_s8 + $0x1e8] sm:$0xff] %v2064_v31  ;;  %vm1903_vm2 = vcmp.ge.f32.partialorder %v1709_v27, 0.0  ;;  %v1968_v36 = vmul.f32 %v3714_v55, %v1709_v27  ;;  %vm1904_vm3 = vcmp.ge.f32.partialorder %v1822_v30, 0.0  ;;  %v1969_v37 = vmul.f32 %v3714_v55, %v1822_v30 }
 0x3c1   : > { %2329 = vst [vmem:[%s3727_s8 + $0x1f8] sm:$0xff] %v2065_v33 }
 0x3c2   : > { %v2032_v45 = vsel %vm1903_vm2, %v1709_v27, %v1968_v36  ;;  %v2033_v39 = vsel %vm1904_vm3, %v1822_v30, %v1969_v37 }
 0x3c3   : > { %2081 = vst [vmem:[%s3727_s8 + $0xe8] sm:$0xff] %v2032_v45 }
 0x3c4   : > { %2313 = vst [vmem:[%s3727_s8 + $0xf8] sm:$0xff] %v2033_v39 }
 0x3c5   : > { %2438 = shalt.err (!%p2435_p5)
}
 0x3c6   : > { %s2499_s11 = smov 128  }
 0x3c7   : > { %2347 = dma.vmem_to_hbm [thread:$0]  (%p2568_p4), %s2148_s20, 8192, %s2150_s25, %s2132_s27, %s2499_s11, %s2499_s11, %s2496_s14  }
 0x3c8 PF: > { %p2353_p6 = scmp.ge.s32.totalorder %s2489_s22, 2  ;;  %s2164_s12 = sand.u32 1, %s2469_s17  }
 0x3c9   : > { %s2165_s8 = scalar_lea.sflag [#allocation5], %s2164_s12 }
 0x3ca   : > { %p2350_p7 = pnand %p2353_p6, %p2575_p8 }
 0x3cc   : > { %p2351_p9 = pneg %p2350_p7 }
 0x3ce   : > { %2464 = dma.done.wait (%p2351_p9), %s2165_s8, 8192  }
 0x3cf   : > { %2466 = vsyncadd (%p2351_p9), %s2165_s8, 4294959104  ;;  %s18_s22 = sadd.s32 1, %s2489_s22   ;;  %s4049_s17 = smov %s2473_s18 }
 0x3d0   : > { %p15_p10 = scmp.ge.s32.totalorder %s18_s22, 4   ;;  %s4050_s18 = smov %s2477_s19 }
 0x3d1   : > { %s4051_s19 = smov %s2581_s29  ;;  %s4052_s20 = smov %s2485_s21 }
 0x3d2   : > { %s4053_s21 = smov %s4055_s24  ;;  %17 = sbr.rel (!%p15_p10) target bundleno = 6 (0x6), region = 73 }
 0x3d7   :  { %2171 = vsyncpa [#allocation5], 1 }
 0x3d8   :  { %2173 = vsyncpa [#allocation5 + $0x1], 1 }

</bundles_post_ra>
